<compile_context>
chip_gen: v7x
topology: tpu7x:2x2x1
jax: 0.10.0
libtpu: 0.0.40
codegen_flags: <defaults>
</compile_context>

<pallas_src>
import jax
import jax.numpy as jnp
from jax.experimental import pallas as pl
from jax.experimental.pallas import tpu as pltpu

C_IN, C1, C_FEAT = 3, 16, 8
C_OCC, C_NORM, C_SPATIAL = 8, 8, 8
HIDDEN, C_OUT = 32, 3

_TAPS = tuple((dy, dx) for dy in (-1, 0, 1) for dx in (-1, 0, 1))


def _round_up(x, m):
    return (x + m - 1) // m * m


def _vmem_limit_bytes():
    # Raise the scoped-VMEM limit above the 16/32 MiB defaults, but never above
    # ~3/4 of physical capacity (64 MiB on v7x, 128 MiB on v5e/v6e).
    try:
        cap = pltpu.get_tpu_info().vmem_capacity_bytes
        return int(min(cap * 3 // 4, 96 * 1024 * 1024))
    except Exception:
        return 48 * 1024 * 1024


_VMEM_LIMIT = _vmem_limit_bytes()


# ------------------------------------------------------------------
# Fused encoder kernel: conv3x3(C_IN->C1)+ReLU -> conv3x3(C1->C_FEAT)+ReLU
# ------------------------------------------------------------------
def _encoder_kernel(x_ref, w1_ref, b1_ref, m1_ref, w2_ref, b2_ref, o_ref, h1_ref):
    # x_ref : (C_IN, L0)   bf16  flattened zero-padded image + E-wide zero halo each side
    # o_ref : (C_FEAT, Sp) f32   conv2 output over all padded coords (ring cut in wrapper)
    # h1_ref: (C1, Sp+2E)  bf16  scratch: conv1 activation with zero halo for conv2 taps
    sp = o_ref.shape[1]
    l0 = x_ref.shape[1]
    e = (l0 - sp) // 2                     # = Wp + 1 == max |tap offset| in flat coords
    wp = e - 1
    c1 = w1_ref.shape[1]
    c2 = w2_ref.shape[1]

    # ---- conv1: 9 shifted (C1, C_IN) @ (C_IN, Sp) GEMMs, f32 accumulation
    acc1 = jnp.zeros((c1, sp), jnp.float32)
    for t, (dy, dx) in enumerate(_TAPS):
        s = e + dy * wp + dx
        acc1 = acc1 + jnp.dot(w1_ref[t], x_ref[:, s:s + sp],
                              preferred_element_type=jnp.float32)
    # bias + ReLU in f32, mask re-establishes the zero-padding ring for conv2
    h1 = jnp.maximum(acc1 + b1_ref[...], 0.0) * m1_ref[...]

    # stash intermediate as bf16 in VMEM with an E-wide zero halo on each side
    h1_ref[:, 0:e] = jnp.zeros((c1, e), h1_ref.dtype)
    h1_ref[:, e + sp:e + sp + e] = jnp.zeros((c1, e), h1_ref.dtype)
    h1_ref[:, e:e + sp] = h1.astype(h1_ref.dtype)

    # ---- conv2: 9 shifted (C_FEAT, C1) @ (C1, Sp) GEMMs
    acc2 = jnp.zeros((c2, sp), jnp.float32)
    for t, (dy, dx) in enumerate(_TAPS):
        s = e + dy * wp + dx
        acc2 = acc2 + jnp.dot(w2_ref[t], h1_ref[:, s:s + sp],
                              preferred_element_type=jnp.float32)
    o_ref[...] = jnp.maximum(acc2 + b2_ref[...], 0.0)


def pallas_encoder(x_nchw, w1, b1, w2, b2):
    """Fused 2-layer 3x3 'same' conv encoder, one grid step per batch element.

    Output is lane-dense (flattened spatial on lanes) and lands directly in NCHW.
    # TODO(synk): for very large images on v7x (64 MiB VMEM) add a second grid
    # axis over row bands with a manually DMA'd halo.
    """
    B, C, H, W = x_nchw.shape
    hp, wp = H + 2, W + 2
    sp = hp * wp
    e = wp + 1
    l0 = sp + 2 * e
    c1 = w1.shape[1]
    c2 = w2.shape[1]

    xpad = jnp.pad(x_nchw, ((0, 0), (0, 0), (1, 1), (1, 1)))
    x_ext = jnp.pad(xpad.reshape(B, C, sp), ((0, 0), (0, 0), (e, e)))
    x_ext = x_ext.astype(jnp.bfloat16)
    mask = jnp.pad(jnp.ones((H, W), jnp.float32), ((1, 1), (1, 1))).reshape(1, sp)

    out = pl.pallas_call(
        _encoder_kernel,
        out_shape=jax.ShapeDtypeStruct((B, c2, sp), jnp.float32),
        grid=(B,),
        in_specs=[
            pl.BlockSpec((None, C, l0), lambda b: (b, 0, 0)),   # image (per batch)
            pl.BlockSpec((9, c1, C), lambda b: (0, 0, 0)),      # conv1 weights (constant)
            pl.BlockSpec((c1, 1), lambda b: (0, 0)),            # conv1 bias
            pl.BlockSpec((1, sp), lambda b: (0, 0)),            # interior mask
            pl.BlockSpec((9, c2, c1), lambda b: (0, 0, 0)),     # conv2 weights (constant)
            pl.BlockSpec((c2, 1), lambda b: (0, 0)),            # conv2 bias
        ],
        out_specs=pl.BlockSpec((None, c2, sp), lambda b: (b, 0, 0)),
        scratch_shapes=[pltpu.VMEM((c1, sp + 2 * e), jnp.bfloat16)],
        compiler_params=pltpu.CompilerParams(
            dimension_semantics=("parallel",),
            vmem_limit_bytes=_VMEM_LIMIT),
    )(x_ext, w1.astype(jnp.bfloat16), b1, mask, w2.astype(jnp.bfloat16), b2)

    # (B, C_FEAT, Hp, Wp) -> drop the padding ring -> NCHW, no transposes needed
    return out.reshape(B, c2, hp, wp)[:, :, 1:-1, 1:-1]


# ------------------------------------------------------------------
# Fused 3-layer point-wise MLP regressor (channels-first, points on lanes)
# ------------------------------------------------------------------
def _mlp_kernel(x_ref, w1_ref, b1_ref, w2_ref, b2_ref, w3_ref, b3_ref, o_ref):
    x = x_ref[...]                                                     # (Cin, tn)
    h = jnp.dot(w1_ref[...], x, preferred_element_type=jnp.float32) + b1_ref[...]
    h = jnp.maximum(h, 0.0)
    h = jnp.dot(w2_ref[...], h, preferred_element_type=jnp.float32) + b2_ref[...]
    h = jnp.maximum(h, 0.0)
    y = jnp.dot(w3_ref[...], h, preferred_element_type=jnp.float32) + b3_ref[...]
    o_ref[...] = jax.nn.sigmoid(y)                                     # RGB in [0,1]


def pallas_regressor(feats, params, tn=2048):
    """3-layer MLP on [B, Cin, N] features -> [B, 3, N]; tiled over point lanes."""
    B, cin, N = feats.shape
    w1, b1, w2, b2, w3, b3 = params
    hd = w1.shape[0]
    co = w3.shape[0]
    tn = min(tn, _round_up(N, 128))
    n_pad = _round_up(N, tn)
    x = jnp.pad(feats, ((0, 0), (0, 0), (0, n_pad - N)))     # ragged N -> zero pad

    out = pl.pallas_call(
        _mlp_kernel,
        out_shape=jax.ShapeDtypeStruct((B, co, n_pad), jnp.float32),
        grid=(B, n_pad // tn),
        in_specs=[
            pl.BlockSpec((None, cin, tn), lambda b, j: (b, 0, j)),
            pl.BlockSpec((hd, cin), lambda b, j: (0, 0)),
            pl.BlockSpec((hd, 1), lambda b, j: (0, 0)),
            pl.BlockSpec((hd, hd), lambda b, j: (0, 0)),
            pl.BlockSpec((hd, 1), lambda b, j: (0, 0)),
            pl.BlockSpec((co, hd), lambda b, j: (0, 0)),
            pl.BlockSpec((co, 1), lambda b, j: (0, 0)),
        ],
        out_specs=pl.BlockSpec((None, co, tn), lambda b, j: (b, 0, j)),
        compiler_params=pltpu.CompilerParams(
            dimension_semantics=("parallel", "parallel"),
            vmem_limit_bytes=_VMEM_LIMIT),
    )(x, w1, b1, w2, b2, w3, b3)
    return out[:, :, :N]


# ------------------------------------------------------------------
# Glue (projection + bilinear sampling) — stays in XLA (data-dependent gather)
# ------------------------------------------------------------------
def project_points(points, azimuth, elevation, distance, image_size):
    """points: [B, N, 3]; azimuth / elevation in degrees -> pixel coords [B, N, 2]."""
    az = jnp.deg2rad(jnp.asarray(azimuth, jnp.float32))
    el = jnp.deg2rad(jnp.asarray(elevation, jnp.float32))
    if az.ndim == 1:
        az = az[:, None]
    if el.ndim == 1:
        el = el[:, None]
    x, y, z = points[..., 0], points[..., 1], points[..., 2]
    ca, sa = jnp.cos(az), jnp.sin(az)
    ce, se = jnp.cos(el), jnp.sin(el)
    xr = ca * x + sa * z                       # yaw about y (azimuth)
    zr = -sa * x + ca * z
    yr = y
    y2 = ce * yr - se * zr                     # pitch about x (elevation)
    z2 = se * yr + ce * zr
    zc = z2 + distance                         # camera looks down +z
    H, W = image_size
    f = 0.5 * W
    u = f * xr / (zc + 1e-8) + 0.5 * (W - 1)
    v = f * y2 / (zc + 1e-8) + 0.5 * (H - 1)
    return jnp.stack([u, v], axis=-1)


def map_points_to_plane(featmap, pixel_coords, image_size=(512, 512)):
    """Bilinear-sample featmap [B,C,Hf,Wf] at pixel coords [B,N,2] -> [B,C,N].

    # TODO(synk): the reference grid_sample's align_corners / padding mode are not
    # in the provided module; this uses align_corners=True + border clamp.
    """
    B, C, Hf, Wf = featmap.shape
    H, W = image_size
    x = pixel_coords[..., 0] / (W - 1) * (Wf - 1)
    y = pixel_coords[..., 1] / (H - 1) * (Hf - 1)
    x = jnp.clip(x, 0.0, Wf - 1.0)             # clamp BEFORE floor: weights consistent
    y = jnp.clip(y, 0.0, Hf - 1.0)
    x0 = jnp.floor(x)
    y0 = jnp.floor(y)
    wx = (x - x0)[:, None, :]
    wy = (y - y0)[:, None, :]
    x0i = x0.astype(jnp.int32)
    y0i = y0.astype(jnp.int32)
    x1i = jnp.minimum(x0i + 1, Wf - 1)
    y1i = jnp.minimum(y0i + 1, Hf - 1)
    gather = jax.vmap(lambda fm, yy, xx: fm[:, yy, xx])       # per batch -> [C, N]
    f00 = gather(featmap, y0i, x0i)
    f01 = gather(featmap, y0i, x1i)
    f10 = gather(featmap, y1i, x0i)
    f11 = gather(featmap, y1i, x1i)
    return (f00 * (1 - wx) * (1 - wy) + f01 * wx * (1 - wy)
            + f10 * (1 - wx) * wy + f11 * wx * wy)             # [B, C, N]


# ------------------------------------------------------------------
# Parameters + forward
# ------------------------------------------------------------------
def init_params(key):
    ks = jax.random.split(key, 5)

    def lin(k, fan_in, shape):
        return (jax.random.normal(k, shape, jnp.float32) / jnp.sqrt(fan_in)).astype(jnp.float32)

    c_cat = C_FEAT + C_OCC + C_NORM + C_SPATIAL
    return dict(
        # conv weights tap-major, GEMM-transposed: (9, C_out, C_in); biases (C_out, 1)
        conv1_w=lin(ks[0], C_IN * 9, (9, C1, C_IN)),
        conv1_b=jnp.zeros((C1, 1), jnp.float32),
        conv2_w=lin(ks[1], C1 * 9, (9, C_FEAT, C1)),
        conv2_b=jnp.zeros((C_FEAT, 1), jnp.float32),
        # MLP weights GEMM-transposed: (out, in); biases column vectors
        mlp_w1=lin(ks[2], c_cat, (HIDDEN, c_cat)),
        mlp_b1=jnp.zeros((HIDDEN, 1), jnp.float32),
        mlp_w2=lin(ks[3], HIDDEN, (HIDDEN, HIDDEN)),
        mlp_b2=jnp.zeros((HIDDEN, 1), jnp.float32),
        mlp_w3=lin(ks[4], HIDDEN, (C_OUT, HIDDEN)),
        mlp_b3=jnp.zeros((C_OUT, 1), jnp.float32),
    )


@jax.jit
def colornet_forward(params, input_image, spatial_feat, occ_feat, norm_feat, points, azimuth):
    # TODO(synk): the original repo's UNet / MLP definitions are not part of the
    # provided module; a 2-layer 3x3 conv encoder + 3-layer point MLP stand in.
    unet_featmap = pallas_encoder(input_image,
                                  params['conv1_w'], params['conv1_b'],
                                  params['conv2_w'], params['conv2_b'])   # [B, C_FEAT, H, W]

    pixel_coords = project_points(points=points, azimuth=azimuth, elevation=0,
                                  distance=1, image_size=(512, 512))
    pixel_aligned_feats_color = map_points_to_plane(unet_featmap, pixel_coords,
                                                    image_size=(512, 512))  # [B, C_FEAT, N]

    # channel concat (dim=1, as torch.cat([...], 1)); everything stays [B, C, N]
    regressor_in = jnp.concatenate(
        [pixel_aligned_feats_color, occ_feat, norm_feat, spatial_feat], axis=1)
    color_pred = pallas_regressor(
        regressor_in,
        (params['mlp_w1'], params['mlp_b1'],
         params['mlp_w2'], params['mlp_b2'],
         params['mlp_w3'], params['mlp_b3']))                                # [B, 3, N]
    return color_pred, pixel_aligned_feats_color


# ------------------------------------------------------------------
if __name__ == "__main__":
    key = jax.random.PRNGKey(0)
    B, H, W, N = 2, 16, 16, 64
    ks = jax.random.split(key, 7)
    params = init_params(ks[0])

    input_image  = jax.random.uniform(ks[1], (B, C_IN, H, W), jnp.float32)
    spatial_feat = jax.random.normal(ks[2], (B, C_SPATIAL, N), jnp.float32)
    occ_feat     = jax.random.normal(ks[3], (B, C_OCC, N), jnp.float32)
    norm_feat    = jax.random.normal(ks[4], (B, C_NORM, N), jnp.float32)
    points       = jax.random.uniform(ks[5], (B, N, 3), jnp.float32, -0.3, 0.3)
    azimuth      = jax.random.uniform(ks[6], (B,), jnp.float32, 0.0, 360.0)

    color_pred, pixel_feats = colornet_forward(
        params, input_image, spatial_feat, occ_feat, norm_feat, points, azimuth)
    jax.block_until_ready((color_pred, pixel_feats))
    assert color_pred.shape == (B, C_OUT, N)
    assert pixel_feats.shape == (B, C_FEAT, N)
    assert bool(jnp.all(jnp.isfinite(color_pred)))
    print("KERNEL_OK")
</pallas_src>

<mosaic_0001>
module attributes {stable_mosaic.version = 11 : i64} {
  func.func @_encoder_kernel(%arg0: i32, %arg1: memref<1x3x362xbf16, #tpu.memory_space<vmem>>, %arg2: memref<9x16x3xbf16, #tpu.memory_space<vmem>>, %arg3: memref<16x1xf32, #tpu.memory_space<vmem>>, %arg4: memref<1x324xf32, #tpu.memory_space<vmem>>, %arg5: memref<9x8x16xbf16, #tpu.memory_space<vmem>>, %arg6: memref<8x1xf32, #tpu.memory_space<vmem>>, %arg7: memref<1x8x324xf32, #tpu.memory_space<vmem>>, %arg8: memref<16x362xbf16, #tpu.memory_space<vmem>>) attributes {dimension_semantics = [#tpu.dimension_semantics<parallel>], iteration_bounds = array<i64: 2>, scalar_prefetch = 0 : i64, scratch_operands = 1 : i64, tpu.core_type = #tpu.core_type<tc>, window_params = [{transform_indices = @transform_0, window_bounds = array<i64: 1, 3, 362>}, {pipeline_mode = #tpu.pipeline_mode<synchronous>, transform_indices = @transform_1, window_bounds = array<i64: 9, 16, 3>}, {pipeline_mode = #tpu.pipeline_mode<synchronous>, transform_indices = @transform_2, window_bounds = array<i64: 16, 1>}, {pipeline_mode = #tpu.pipeline_mode<synchronous>, transform_indices = @transform_3, window_bounds = array<i64: 1, 324>}, {pipeline_mode = #tpu.pipeline_mode<synchronous>, transform_indices = @transform_4, window_bounds = array<i64: 9, 8, 16>}, {pipeline_mode = #tpu.pipeline_mode<synchronous>, transform_indices = @transform_5, window_bounds = array<i64: 8, 1>}, {transform_indices = @transform_6, window_bounds = array<i64: 1, 8, 324>}]} {
    %cst = arith.constant 0.000000e+00 : f32
    %0 = vector.broadcast %cst : f32 to vector<16x324xf32>
    %c0 = arith.constant 0 : index
    %c0_0 = arith.constant 0 : index
    %c0_1 = arith.constant 0 : index
    %1 = vector.load %arg2[%c0, %c0_0, %c0_1] : memref<9x16x3xbf16, #tpu.memory_space<vmem>>, vector<1x16x3xbf16>
    %2 = vector.shape_cast %1 : vector<1x16x3xbf16> to vector<16x3xbf16>
    %c0_2 = arith.constant 0 : index
    %c0_3 = arith.constant 0 : index
    %c0_4 = arith.constant 0 : index
    %3 = vector.load %arg1[%c0_2, %c0_3, %c0_4] : memref<1x3x362xbf16, #tpu.memory_space<vmem>>, vector<1x3x324xbf16>
    %4 = vector.shape_cast %3 : vector<1x3x324xbf16> to vector<3x324xbf16>
    %cst_5 = arith.constant dense<0.000000e+00> : vector<16x324xf32>
    %5 = tpu.matmul %2, %4, %cst_5 {dimension_numbers = #tpu.dot_dimension_numbers<[1], [0], [0], [1], [0, 0, 1, 1], [], []>} : vector<16x3xbf16>, vector<3x324xbf16>, vector<16x324xf32> -> vector<16x324xf32>
    %6 = arith.addf %0, %5 : vector<16x324xf32>
    %c1 = arith.constant 1 : index
    %c0_6 = arith.constant 0 : index
    %c0_7 = arith.constant 0 : index
    %7 = vector.load %arg2[%c1, %c0_6, %c0_7] : memref<9x16x3xbf16, #tpu.memory_space<vmem>>, vector<1x16x3xbf16>
    %8 = vector.shape_cast %7 : vector<1x16x3xbf16> to vector<16x3xbf16>
    %c0_8 = arith.constant 0 : index
    %c0_9 = arith.constant 0 : index
    %c1_10 = arith.constant 1 : index
    %9 = vector.load %arg1[%c0_8, %c0_9, %c1_10] : memref<1x3x362xbf16, #tpu.memory_space<vmem>>, vector<1x3x324xbf16>
    %10 = vector.shape_cast %9 : vector<1x3x324xbf16> to vector<3x324xbf16>
    %cst_11 = arith.constant dense<0.000000e+00> : vector<16x324xf32>
    %11 = tpu.matmul %8, %10, %cst_11 {dimension_numbers = #tpu.dot_dimension_numbers<[1], [0], [0], [1], [0, 0, 1, 1], [], []>} : vector<16x3xbf16>, vector<3x324xbf16>, vector<16x324xf32> -> vector<16x324xf32>
    %12 = arith.addf %6, %11 : vector<16x324xf32>
    %c2 = arith.constant 2 : index
    %c0_12 = arith.constant 0 : index
    %c0_13 = arith.constant 0 : index
    %13 = vector.load %arg2[%c2, %c0_12, %c0_13] : memref<9x16x3xbf16, #tpu.memory_space<vmem>>, vector<1x16x3xbf16>
    %14 = vector.shape_cast %13 : vector<1x16x3xbf16> to vector<16x3xbf16>
    %c0_14 = arith.constant 0 : index
    %c0_15 = arith.constant 0 : index
    %c2_16 = arith.constant 2 : index
    %15 = vector.load %arg1[%c0_14, %c0_15, %c2_16] : memref<1x3x362xbf16, #tpu.memory_space<vmem>>, vector<1x3x324xbf16>
    %16 = vector.shape_cast %15 : vector<1x3x324xbf16> to vector<3x324xbf16>
    %cst_17 = arith.constant dense<0.000000e+00> : vector<16x324xf32>
    %17 = tpu.matmul %14, %16, %cst_17 {dimension_numbers = #tpu.dot_dimension_numbers<[1], [0], [0], [1], [0, 0, 1, 1], [], []>} : vector<16x3xbf16>, vector<3x324xbf16>, vector<16x324xf32> -> vector<16x324xf32>
    %18 = arith.addf %12, %17 : vector<16x324xf32>
    %c3 = arith.constant 3 : index
    %c0_18 = arith.constant 0 : index
    %c0_19 = arith.constant 0 : index
    %19 = vector.load %arg2[%c3, %c0_18, %c0_19] : memref<9x16x3xbf16, #tpu.memory_space<vmem>>, vector<1x16x3xbf16>
    %20 = vector.shape_cast %19 : vector<1x16x3xbf16> to vector<16x3xbf16>
    %c0_20 = arith.constant 0 : index
    %c0_21 = arith.constant 0 : index
    %c18 = arith.constant 18 : index
    %21 = vector.load %arg1[%c0_20, %c0_21, %c18] : memref<1x3x362xbf16, #tpu.memory_space<vmem>>, vector<1x3x324xbf16>
    %22 = vector.shape_cast %21 : vector<1x3x324xbf16> to vector<3x324xbf16>
    %cst_22 = arith.constant dense<0.000000e+00> : vector<16x324xf32>
    %23 = tpu.matmul %20, %22, %cst_22 {dimension_numbers = #tpu.dot_dimension_numbers<[1], [0], [0], [1], [0, 0, 1, 1], [], []>} : vector<16x3xbf16>, vector<3x324xbf16>, vector<16x324xf32> -> vector<16x324xf32>
    %24 = arith.addf %18, %23 : vector<16x324xf32>
    %c4 = arith.constant 4 : index
    %c0_23 = arith.constant 0 : index
    %c0_24 = arith.constant 0 : index
    %25 = vector.load %arg2[%c4, %c0_23, %c0_24] : memref<9x16x3xbf16, #tpu.memory_space<vmem>>, vector<1x16x3xbf16>
    %26 = vector.shape_cast %25 : vector<1x16x3xbf16> to vector<16x3xbf16>
    %c0_25 = arith.constant 0 : index
    %c0_26 = arith.constant 0 : index
    %c19 = arith.constant 19 : index
    %27 = vector.load %arg1[%c0_25, %c0_26, %c19] : memref<1x3x362xbf16, #tpu.memory_space<vmem>>, vector<1x3x324xbf16>
    %28 = vector.shape_cast %27 : vector<1x3x324xbf16> to vector<3x324xbf16>
    %cst_27 = arith.constant dense<0.000000e+00> : vector<16x324xf32>
    %29 = tpu.matmul %26, %28, %cst_27 {dimension_numbers = #tpu.dot_dimension_numbers<[1], [0], [0], [1], [0, 0, 1, 1], [], []>} : vector<16x3xbf16>, vector<3x324xbf16>, vector<16x324xf32> -> vector<16x324xf32>
    %30 = arith.addf %24, %29 : vector<16x324xf32>
    %c5 = arith.constant 5 : index
    %c0_28 = arith.constant 0 : index
    %c0_29 = arith.constant 0 : index
    %31 = vector.load %arg2[%c5, %c0_28, %c0_29] : memref<9x16x3xbf16, #tpu.memory_space<vmem>>, vector<1x16x3xbf16>
    %32 = vector.shape_cast %31 : vector<1x16x3xbf16> to vector<16x3xbf16>
    %c0_30 = arith.constant 0 : index
    %c0_31 = arith.constant 0 : index
    %c20 = arith.constant 20 : index
    %33 = vector.load %arg1[%c0_30, %c0_31, %c20] : memref<1x3x362xbf16, #tpu.memory_space<vmem>>, vector<1x3x324xbf16>
    %34 = vector.shape_cast %33 : vector<1x3x324xbf16> to vector<3x324xbf16>
    %cst_32 = arith.constant dense<0.000000e+00> : vector<16x324xf32>
    %35 = tpu.matmul %32, %34, %cst_32 {dimension_numbers = #tpu.dot_dimension_numbers<[1], [0], [0], [1], [0, 0, 1, 1], [], []>} : vector<16x3xbf16>, vector<3x324xbf16>, vector<16x324xf32> -> vector<16x324xf32>
    %36 = arith.addf %30, %35 : vector<16x324xf32>
    %c6 = arith.constant 6 : index
    %c0_33 = arith.constant 0 : index
    %c0_34 = arith.constant 0 : index
    %37 = vector.load %arg2[%c6, %c0_33, %c0_34] : memref<9x16x3xbf16, #tpu.memory_space<vmem>>, vector<1x16x3xbf16>
    %38 = vector.shape_cast %37 : vector<1x16x3xbf16> to vector<16x3xbf16>
    %c0_35 = arith.constant 0 : index
    %c0_36 = arith.constant 0 : index
    %c36 = arith.constant 36 : index
    %39 = vector.load %arg1[%c0_35, %c0_36, %c36] : memref<1x3x362xbf16, #tpu.memory_space<vmem>>, vector<1x3x324xbf16>
    %40 = vector.shape_cast %39 : vector<1x3x324xbf16> to vector<3x324xbf16>
    %cst_37 = arith.constant dense<0.000000e+00> : vector<16x324xf32>
    %41 = tpu.matmul %38, %40, %cst_37 {dimension_numbers = #tpu.dot_dimension_numbers<[1], [0], [0], [1], [0, 0, 1, 1], [], []>} : vector<16x3xbf16>, vector<3x324xbf16>, vector<16x324xf32> -> vector<16x324xf32>
    %42 = arith.addf %36, %41 : vector<16x324xf32>
    %c7 = arith.constant 7 : index
    %c0_38 = arith.constant 0 : index
    %c0_39 = arith.constant 0 : index
    %43 = vector.load %arg2[%c7, %c0_38, %c0_39] : memref<9x16x3xbf16, #tpu.memory_space<vmem>>, vector<1x16x3xbf16>
    %44 = vector.shape_cast %43 : vector<1x16x3xbf16> to vector<16x3xbf16>
    %c0_40 = arith.constant 0 : index
    %c0_41 = arith.constant 0 : index
    %c37 = arith.constant 37 : index
    %45 = vector.load %arg1[%c0_40, %c0_41, %c37] : memref<1x3x362xbf16, #tpu.memory_space<vmem>>, vector<1x3x324xbf16>
    %46 = vector.shape_cast %45 : vector<1x3x324xbf16> to vector<3x324xbf16>
    %cst_42 = arith.constant dense<0.000000e+00> : vector<16x324xf32>
    %47 = tpu.matmul %44, %46, %cst_42 {dimension_numbers = #tpu.dot_dimension_numbers<[1], [0], [0], [1], [0, 0, 1, 1], [], []>} : vector<16x3xbf16>, vector<3x324xbf16>, vector<16x324xf32> -> vector<16x324xf32>
    %48 = arith.addf %42, %47 : vector<16x324xf32>
    %c8 = arith.constant 8 : index
    %c0_43 = arith.constant 0 : index
    %c0_44 = arith.constant 0 : index
    %49 = vector.load %arg2[%c8, %c0_43, %c0_44] : memref<9x16x3xbf16, #tpu.memory_space<vmem>>, vector<1x16x3xbf16>
    %50 = vector.shape_cast %49 : vector<1x16x3xbf16> to vector<16x3xbf16>
    %c0_45 = arith.constant 0 : index
    %c0_46 = arith.constant 0 : index
    %c38 = arith.constant 38 : index
    %51 = vector.load %arg1[%c0_45, %c0_46, %c38] : memref<1x3x362xbf16, #tpu.memory_space<vmem>>, vector<1x3x324xbf16>
    %52 = vector.shape_cast %51 : vector<1x3x324xbf16> to vector<3x324xbf16>
    %cst_47 = arith.constant dense<0.000000e+00> : vector<16x324xf32>
    %53 = tpu.matmul %50, %52, %cst_47 {dimension_numbers = #tpu.dot_dimension_numbers<[1], [0], [0], [1], [0, 0, 1, 1], [], []>} : vector<16x3xbf16>, vector<3x324xbf16>, vector<16x324xf32> -> vector<16x324xf32>
    %54 = arith.addf %48, %53 : vector<16x324xf32>
    %c0_48 = arith.constant 0 : index
    %c0_49 = arith.constant 0 : index
    %55 = vector.load %arg3[%c0_48, %c0_49] : memref<16x1xf32, #tpu.memory_space<vmem>>, vector<16x1xf32>
    %56 = vector.broadcast %55 : vector<16x1xf32> to vector<16x324xf32>
    %57 = arith.addf %54, %56 : vector<16x324xf32>
    %cst_50 = arith.constant 0.000000e+00 : f32
    %58 = vector.broadcast %cst_50 : f32 to vector<16x324xf32>
    %59 = arith.maximumf %57, %58 : vector<16x324xf32>
    %c0_51 = arith.constant 0 : index
    %c0_52 = arith.constant 0 : index
    %60 = vector.load %arg4[%c0_51, %c0_52] : memref<1x324xf32, #tpu.memory_space<vmem>>, vector<1x324xf32>
    %61 = vector.broadcast %60 : vector<1x324xf32> to vector<16x324xf32>
    %62 = arith.mulf %59, %61 : vector<16x324xf32>
    %cst_53 = arith.constant 0.000000e+00 : bf16
    %63 = vector.broadcast %cst_53 : bf16 to vector<16x19xbf16>
    %c0_54 = arith.constant 0 : index
    %c0_55 = arith.constant 0 : index
    %64 = vector.load %arg8[%c0_54, %c0_55] : memref<16x362xbf16, #tpu.memory_space<vmem>>, vector<16x19xbf16>
    tpu.vector_store %arg8[%c0_54, %c0_55], %63 {strides = array<i32>} : memref<16x362xbf16, #tpu.memory_space<vmem>>, vector<16x19xbf16>,
    %cst_56 = arith.constant 0.000000e+00 : bf16
    %65 = vector.broadcast %cst_56 : bf16 to vector<16x19xbf16>
    %c0_57 = arith.constant 0 : index
    %c343 = arith.constant 343 : index
    %66 = vector.load %arg8[%c0_57, %c343] : memref<16x362xbf16, #tpu.memory_space<vmem>>, vector<16x19xbf16>
    tpu.vector_store %arg8[%c0_57, %c343], %65 {strides = array<i32>} : memref<16x362xbf16, #tpu.memory_space<vmem>>, vector<16x19xbf16>,
    %67 = arith.truncf %62 : vector<16x324xf32> to vector<16x324xbf16>
    %c0_58 = arith.constant 0 : index
    %c19_59 = arith.constant 19 : index
    %68 = vector.load %arg8[%c0_58, %c19_59] : memref<16x362xbf16, #tpu.memory_space<vmem>>, vector<16x324xbf16>
    tpu.vector_store %arg8[%c0_58, %c19_59], %67 {strides = array<i32>} : memref<16x362xbf16, #tpu.memory_space<vmem>>, vector<16x324xbf16>,
    %cst_60 = arith.constant 0.000000e+00 : f32
    %69 = vector.broadcast %cst_60 : f32 to vector<8x324xf32>
    %c0_61 = arith.constant 0 : index
    %c0_62 = arith.constant 0 : index
    %c0_63 = arith.constant 0 : index
    %70 = vector.load %arg5[%c0_61, %c0_62, %c0_63] : memref<9x8x16xbf16, #tpu.memory_space<vmem>>, vector<1x8x16xbf16>
    %71 = vector.shape_cast %70 : vector<1x8x16xbf16> to vector<8x16xbf16>
    %c0_64 = arith.constant 0 : index
    %c0_65 = arith.constant 0 : index
    %72 = vector.load %arg8[%c0_64, %c0_65] : memref<16x362xbf16, #tpu.memory_space<vmem>>, vector<16x324xbf16>
    %cst_66 = arith.constant dense<0.000000e+00> : vector<8x324xf32>
    %73 = tpu.matmul %71, %72, %cst_66 {dimension_numbers = #tpu.dot_dimension_numbers<[1], [0], [0], [1], [0, 0, 1, 1], [], []>} : vector<8x16xbf16>, vector<16x324xbf16>, vector<8x324xf32> -> vector<8x324xf32>
    %74 = arith.addf %69, %73 : vector<8x324xf32>
    %c1_67 = arith.constant 1 : index
    %c0_68 = arith.constant 0 : index
    %c0_69 = arith.constant 0 : index
    %75 = vector.load %arg5[%c1_67, %c0_68, %c0_69] : memref<9x8x16xbf16, #tpu.memory_space<vmem>>, vector<1x8x16xbf16>
    %76 = vector.shape_cast %75 : vector<1x8x16xbf16> to vector<8x16xbf16>
    %c0_70 = arith.constant 0 : index
    %c1_71 = arith.constant 1 : index
    %77 = vector.load %arg8[%c0_70, %c1_71] : memref<16x362xbf16, #tpu.memory_space<vmem>>, vector<16x324xbf16>
    %cst_72 = arith.constant dense<0.000000e+00> : vector<8x324xf32>
    %78 = tpu.matmul %76, %77, %cst_72 {dimension_numbers = #tpu.dot_dimension_numbers<[1], [0], [0], [1], [0, 0, 1, 1], [], []>} : vector<8x16xbf16>, vector<16x324xbf16>, vector<8x324xf32> -> vector<8x324xf32>
    %79 = arith.addf %74, %78 : vector<8x324xf32>
    %c2_73 = arith.constant 2 : index
    %c0_74 = arith.constant 0 : index
    %c0_75 = arith.constant 0 : index
    %80 = vector.load %arg5[%c2_73, %c0_74, %c0_75] : memref<9x8x16xbf16, #tpu.memory_space<vmem>>, vector<1x8x16xbf16>
    %81 = vector.shape_cast %80 : vector<1x8x16xbf16> to vector<8x16xbf16>
    %c0_76 = arith.constant 0 : index
    %c2_77 = arith.constant 2 : index
    %82 = vector.load %arg8[%c0_76, %c2_77] : memref<16x362xbf16, #tpu.memory_space<vmem>>, vector<16x324xbf16>
    %cst_78 = arith.constant dense<0.000000e+00> : vector<8x324xf32>
    %83 = tpu.matmul %81, %82, %cst_78 {dimension_numbers = #tpu.dot_dimension_numbers<[1], [0], [0], [1], [0, 0, 1, 1], [], []>} : vector<8x16xbf16>, vector<16x324xbf16>, vector<8x324xf32> -> vector<8x324xf32>
    %84 = arith.addf %79, %83 : vector<8x324xf32>
    %c3_79 = arith.constant 3 : index
    %c0_80 = arith.constant 0 : index
    %c0_81 = arith.constant 0 : index
    %85 = vector.load %arg5[%c3_79, %c0_80, %c0_81] : memref<9x8x16xbf16, #tpu.memory_space<vmem>>, vector<1x8x16xbf16>
    %86 = vector.shape_cast %85 : vector<1x8x16xbf16> to vector<8x16xbf16>
    %c0_82 = arith.constant 0 : index
    %c18_83 = arith.constant 18 : index
    %87 = vector.load %arg8[%c0_82, %c18_83] : memref<16x362xbf16, #tpu.memory_space<vmem>>, vector<16x324xbf16>
    %cst_84 = arith.constant dense<0.000000e+00> : vector<8x324xf32>
    %88 = tpu.matmul %86, %87, %cst_84 {dimension_numbers = #tpu.dot_dimension_numbers<[1], [0], [0], [1], [0, 0, 1, 1], [], []>} : vector<8x16xbf16>, vector<16x324xbf16>, vector<8x324xf32> -> vector<8x324xf32>
    %89 = arith.addf %84, %88 : vector<8x324xf32>
    %c4_85 = arith.constant 4 : index
    %c0_86 = arith.constant 0 : index
    %c0_87 = arith.constant 0 : index
    %90 = vector.load %arg5[%c4_85, %c0_86, %c0_87] : memref<9x8x16xbf16, #tpu.memory_space<vmem>>, vector<1x8x16xbf16>
    %91 = vector.shape_cast %90 : vector<1x8x16xbf16> to vector<8x16xbf16>
    %c0_88 = arith.constant 0 : index
    %c19_89 = arith.constant 19 : index
    %92 = vector.load %arg8[%c0_88, %c19_89] : memref<16x362xbf16, #tpu.memory_space<vmem>>, vector<16x324xbf16>
    %cst_90 = arith.constant dense<0.000000e+00> : vector<8x324xf32>
    %93 = tpu.matmul %91, %92, %cst_90 {dimension_numbers = #tpu.dot_dimension_numbers<[1], [0], [0], [1], [0, 0, 1, 1], [], []>} : vector<8x16xbf16>, vector<16x324xbf16>, vector<8x324xf32> -> vector<8x324xf32>
    %94 = arith.addf %89, %93 : vector<8x324xf32>
    %c5_91 = arith.constant 5 : index
    %c0_92 = arith.constant 0 : index
    %c0_93 = arith.constant 0 : index
    %95 = vector.load %arg5[%c5_91, %c0_92, %c0_93] : memref<9x8x16xbf16, #tpu.memory_space<vmem>>, vector<1x8x16xbf16>
    %96 = vector.shape_cast %95 : vector<1x8x16xbf16> to vector<8x16xbf16>
    %c0_94 = arith.constant 0 : index
    %c20_95 = arith.constant 20 : index
    %97 = vector.load %arg8[%c0_94, %c20_95] : memref<16x362xbf16, #tpu.memory_space<vmem>>, vector<16x324xbf16>
    %cst_96 = arith.constant dense<0.000000e+00> : vector<8x324xf32>
    %98 = tpu.matmul %96, %97, %cst_96 {dimension_numbers = #tpu.dot_dimension_numbers<[1], [0], [0], [1], [0, 0, 1, 1], [], []>} : vector<8x16xbf16>, vector<16x324xbf16>, vector<8x324xf32> -> vector<8x324xf32>
    %99 = arith.addf %94, %98 : vector<8x324xf32>
    %c6_97 = arith.constant 6 : index
    %c0_98 = arith.constant 0 : index
    %c0_99 = arith.constant 0 : index
    %100 = vector.load %arg5[%c6_97, %c0_98, %c0_99] : memref<9x8x16xbf16, #tpu.memory_space<vmem>>, vector<1x8x16xbf16>
    %101 = vector.shape_cast %100 : vector<1x8x16xbf16> to vector<8x16xbf16>
    %c0_100 = arith.constant 0 : index
    %c36_101 = arith.constant 36 : index
    %102 = vector.load %arg8[%c0_100, %c36_101] : memref<16x362xbf16, #tpu.memory_space<vmem>>, vector<16x324xbf16>
    %cst_102 = arith.constant dense<0.000000e+00> : vector<8x324xf32>
    %103 = tpu.matmul %101, %102, %cst_102 {dimension_numbers = #tpu.dot_dimension_numbers<[1], [0], [0], [1], [0, 0, 1, 1], [], []>} : vector<8x16xbf16>, vector<16x324xbf16>, vector<8x324xf32> -> vector<8x324xf32>
    %104 = arith.addf %99, %103 : vector<8x324xf32>
    %c7_103 = arith.constant 7 : index
    %c0_104 = arith.constant 0 : index
    %c0_105 = arith.constant 0 : index
    %105 = vector.load %arg5[%c7_103, %c0_104, %c0_105] : memref<9x8x16xbf16, #tpu.memory_space<vmem>>, vector<1x8x16xbf16>
    %106 = vector.shape_cast %105 : vector<1x8x16xbf16> to vector<8x16xbf16>
    %c0_106 = arith.constant 0 : index
    %c37_107 = arith.constant 37 : index
    %107 = vector.load %arg8[%c0_106, %c37_107] : memref<16x362xbf16, #tpu.memory_space<vmem>>, vector<16x324xbf16>
    %cst_108 = arith.constant dense<0.000000e+00> : vector<8x324xf32>
    %108 = tpu.matmul %106, %107, %cst_108 {dimension_numbers = #tpu.dot_dimension_numbers<[1], [0], [0], [1], [0, 0, 1, 1], [], []>} : vector<8x16xbf16>, vector<16x324xbf16>, vector<8x324xf32> -> vector<8x324xf32>
    %109 = arith.addf %104, %108 : vector<8x324xf32>
    %c8_109 = arith.constant 8 : index
    %c0_110 = arith.constant 0 : index
    %c0_111 = arith.constant 0 : index
    %110 = vector.load %arg5[%c8_109, %c0_110, %c0_111] : memref<9x8x16xbf16, #tpu.memory_space<vmem>>, vector<1x8x16xbf16>
    %111 = vector.shape_cast %110 : vector<1x8x16xbf16> to vector<8x16xbf16>
    %c0_112 = arith.constant 0 : index
    %c38_113 = arith.constant 38 : index
    %112 = vector.load %arg8[%c0_112, %c38_113] : memref<16x362xbf16, #tpu.memory_space<vmem>>, vector<16x324xbf16>
    %cst_114 = arith.constant dense<0.000000e+00> : vector<8x324xf32>
    %113 = tpu.matmul %111, %112, %cst_114 {dimension_numbers = #tpu.dot_dimension_numbers<[1], [0], [0], [1], [0, 0, 1, 1], [], []>} : vector<8x16xbf16>, vector<16x324xbf16>, vector<8x324xf32> -> vector<8x324xf32>
    %114 = arith.addf %109, %113 : vector<8x324xf32>
    %c0_115 = arith.constant 0 : index
    %c0_116 = arith.constant 0 : index
    %115 = vector.load %arg6[%c0_115, %c0_116] : memref<8x1xf32, #tpu.memory_space<vmem>>, vector<8x1xf32>
    %116 = vector.broadcast %115 : vector<8x1xf32> to vector<8x324xf32>
    %117 = arith.addf %114, %116 : vector<8x324xf32>
    %cst_117 = arith.constant 0.000000e+00 : f32
    %118 = vector.broadcast %cst_117 : f32 to vector<8x324xf32>
    %119 = arith.maximumf %117, %118 : vector<8x324xf32>
    %c0_118 = arith.constant 0 : index
    %c0_119 = arith.constant 0 : index
    %c0_120 = arith.constant 0 : index
    %120 = vector.load %arg7[%c0_118, %c0_119, %c0_120] : memref<1x8x324xf32, #tpu.memory_space<vmem>>, vector<1x8x324xf32>
    %121 = vector.shape_cast %120 : vector<1x8x324xf32> to vector<8x324xf32>
    %122 = vector.shape_cast %119 : vector<8x324xf32> to vector<1x8x324xf32>
    tpu.vector_store %arg7[%c0_118, %c0_119, %c0_120], %122 {strides = array<i32>} : memref<1x8x324xf32, #tpu.memory_space<vmem>>, vector<1x8x324xf32>,
    return
  }
  func.func @transform_0(%arg0: i32) -> (i32, i32, i32) {
    %c0_i32 = arith.constant 0 : i32
    %c0_i32_0 = arith.constant 0 : i32
    %c0_i32_1 = arith.constant 0 : i32
    return %arg0, %c0_i32, %c0_i32_0 : i32, i32, i32
  }
  func.func @transform_1(%arg0: i32) -> (i32, i32, i32) {
    %c0_i32 = arith.constant 0 : i32
    %c0_i32_0 = arith.constant 0 : i32
    %c0_i32_1 = arith.constant 0 : i32
    %c0_i32_2 = arith.constant 0 : i32
    return %c0_i32, %c0_i32_0, %c0_i32_1 : i32, i32, i32
  }
  func.func @transform_2(%arg0: i32) -> (i32, i32) {
    %c0_i32 = arith.constant 0 : i32
    %c0_i32_0 = arith.constant 0 : i32
    %c0_i32_1 = arith.constant 0 : i32
    return %c0_i32, %c0_i32_0 : i32, i32
  }
  func.func @transform_3(%arg0: i32) -> (i32, i32) {
    %c0_i32 = arith.constant 0 : i32
    %c0_i32_0 = arith.constant 0 : i32
    %c0_i32_1 = arith.constant 0 : i32
    return %c0_i32, %c0_i32_0 : i32, i32
  }
  func.func @transform_4(%arg0: i32) -> (i32, i32, i32) {
    %c0_i32 = arith.constant 0 : i32
    %c0_i32_0 = arith.constant 0 : i32
    %c0_i32_1 = arith.constant 0 : i32
    %c0_i32_2 = arith.constant 0 : i32
    return %c0_i32, %c0_i32_0, %c0_i32_1 : i32, i32, i32
  }
  func.func @transform_5(%arg0: i32) -> (i32, i32) {
    %c0_i32 = arith.constant 0 : i32
    %c0_i32_0 = arith.constant 0 : i32
    %c0_i32_1 = arith.constant 0 : i32
    return %c0_i32, %c0_i32_0 : i32, i32
  }
  func.func @transform_6(%arg0: i32) -> (i32, i32, i32) {
    %c0_i32 = arith.constant 0 : i32
    %c0_i32_0 = arith.constant 0 : i32
    %c0_i32_1 = arith.constant 0 : i32
    return %arg0, %c0_i32, %c0_i32_0 : i32, i32, i32
  }
}

module attributes {stable_mosaic.version = 11 : i64} {
  func.func @_mlp_kernel(%arg0: i32, %arg1: i32, %arg2: memref<1x32x128xf32, #tpu.memory_space<vmem>>, %arg3: memref<32x32xf32, #tpu.memory_space<vmem>>, %arg4: memref<32x1xf32, #tpu.memory_space<vmem>>, %arg5: memref<32x32xf32, #tpu.memory_space<vmem>>, %arg6: memref<32x1xf32, #tpu.memory_space<vmem>>, %arg7: memref<3x32xf32, #tpu.memory_space<vmem>>, %arg8: memref<3x1xf32, #tpu.memory_space<vmem>>, %arg9: memref<1x3x128xf32, #tpu.memory_space<vmem>>) attributes {dimension_semantics = [#tpu.dimension_semantics<parallel>, #tpu.dimension_semantics<parallel>], iteration_bounds = array<i64: 2, 1>, scalar_prefetch = 0 : i64, scratch_operands = 0 : i64, tpu.core_type = #tpu.core_type<tc>, window_params = [{transform_indices = @transform_0, window_bounds = array<i64: 1, 32, 128>}, {pipeline_mode = #tpu.pipeline_mode<synchronous>, transform_indices = @transform_1, window_bounds = array<i64: 32, 32>}, {pipeline_mode = #tpu.pipeline_mode<synchronous>, transform_indices = @transform_2, window_bounds = array<i64: 32, 1>}, {pipeline_mode = #tpu.pipeline_mode<synchronous>, transform_indices = @transform_3, window_bounds = array<i64: 32, 32>}, {pipeline_mode = #tpu.pipeline_mode<synchronous>, transform_indices = @transform_4, window_bounds = array<i64: 32, 1>}, {pipeline_mode = #tpu.pipeline_mode<synchronous>, transform_indices = @transform_5, window_bounds = array<i64: 3, 32>}, {pipeline_mode = #tpu.pipeline_mode<synchronous>, transform_indices = @transform_6, window_bounds = array<i64: 3, 1>}, {transform_indices = @transform_7, window_bounds = array<i64: 1, 3, 128>}]} {
    %c0 = arith.constant 0 : index
    %c0_0 = arith.constant 0 : index
    %c0_1 = arith.constant 0 : index
    %0 = vector.load %arg2[%c0, %c0_0, %c0_1] : memref<1x32x128xf32, #tpu.memory_space<vmem>>, vector<1x32x128xf32>
    %1 = vector.shape_cast %0 : vector<1x32x128xf32> to vector<32x128xf32>
    %c0_2 = arith.constant 0 : index
    %c0_3 = arith.constant 0 : index
    %2 = vector.load %arg3[%c0_2, %c0_3] : memref<32x32xf32, #tpu.memory_space<vmem>>, vector<32x32xf32>
    %cst = arith.constant dense<0.000000e+00> : vector<32x128xf32>
    %3 = tpu.matmul %2, %1, %cst {dimension_numbers = #tpu.dot_dimension_numbers<[1], [0], [0], [1], [0, 0, 1, 1], [], []>} : vector<32x32xf32>, vector<32x128xf32>, vector<32x128xf32> -> vector<32x128xf32>
    %c0_4 = arith.constant 0 : index
    %c0_5 = arith.constant 0 : index
    %4 = vector.load %arg4[%c0_4, %c0_5] : memref<32x1xf32, #tpu.memory_space<vmem>>, vector<32x1xf32>
    %5 = vector.broadcast %4 : vector<32x1xf32> to vector<32x128xf32>
    %6 = arith.addf %3, %5 : vector<32x128xf32>
    %cst_6 = arith.constant 0.000000e+00 : f32
    %7 = vector.broadcast %cst_6 : f32 to vector<32x128xf32>
    %8 = arith.maximumf %6, %7 : vector<32x128xf32>
    %c0_7 = arith.constant 0 : index
    %c0_8 = arith.constant 0 : index
    %9 = vector.load %arg5[%c0_7, %c0_8] : memref<32x32xf32, #tpu.memory_space<vmem>>, vector<32x32xf32>
    %cst_9 = arith.constant dense<0.000000e+00> : vector<32x128xf32>
    %10 = tpu.matmul %9, %8, %cst_9 {dimension_numbers = #tpu.dot_dimension_numbers<[1], [0], [0], [1], [0, 0, 1, 1], [], []>} : vector<32x32xf32>, vector<32x128xf32>, vector<32x128xf32> -> vector<32x128xf32>
    %c0_10 = arith.constant 0 : index
    %c0_11 = arith.constant 0 : index
    %11 = vector.load %arg6[%c0_10, %c0_11] : memref<32x1xf32, #tpu.memory_space<vmem>>, vector<32x1xf32>
    %12 = vector.broadcast %11 : vector<32x1xf32> to vector<32x128xf32>
    %13 = arith.addf %10, %12 : vector<32x128xf32>
    %cst_12 = arith.constant 0.000000e+00 : f32
    %14 = vector.broadcast %cst_12 : f32 to vector<32x128xf32>
    %15 = arith.maximumf %13, %14 : vector<32x128xf32>
    %c0_13 = arith.constant 0 : index
    %c0_14 = arith.constant 0 : index
    %16 = vector.load %arg7[%c0_13, %c0_14] : memref<3x32xf32, #tpu.memory_space<vmem>>, vector<3x32xf32>
    %cst_15 = arith.constant dense<0.000000e+00> : vector<3x128xf32>
    %17 = tpu.matmul %16, %15, %cst_15 {dimension_numbers = #tpu.dot_dimension_numbers<[1], [0], [0], [1], [0, 0, 1, 1], [], []>} : vector<3x32xf32>, vector<32x128xf32>, vector<3x128xf32> -> vector<3x128xf32>
    %c0_16 = arith.constant 0 : index
    %c0_17 = arith.constant 0 : index
    %18 = vector.load %arg8[%c0_16, %c0_17] : memref<3x1xf32, #tpu.memory_space<vmem>>, vector<3x1xf32>
    %19 = vector.broadcast %18 : vector<3x1xf32> to vector<3x128xf32>
    %20 = arith.addf %17, %19 : vector<3x128xf32>
    %21 = arith.negf %20 : vector<3x128xf32>
    %22 = math.exp %21 : vector<3x128xf32>
    %cst_18 = arith.constant 1.000000e+00 : f32
    %23 = vector.broadcast %cst_18 : f32 to vector<3x128xf32>
    %24 = arith.addf %23, %22 : vector<3x128xf32>
    %25 = arith.divf %23, %24 : vector<3x128xf32>
    %c0_19 = arith.constant 0 : index
    %c0_20 = arith.constant 0 : index
    %c0_21 = arith.constant 0 : index
    %26 = vector.load %arg9[%c0_19, %c0_20, %c0_21] : memref<1x3x128xf32, #tpu.memory_space<vmem>>, vector<1x3x128xf32>
    %27 = vector.shape_cast %26 : vector<1x3x128xf32> to vector<3x128xf32>
    %28 = vector.shape_cast %25 : vector<3x128xf32> to vector<1x3x128xf32>
    tpu.vector_store %arg9[%c0_19, %c0_20, %c0_21], %28 {strides = array<i32>} : memref<1x3x128xf32, #tpu.memory_space<vmem>>, vector<1x3x128xf32>,
    return
  }
  func.func @transform_0(%arg0: i32, %arg1: i32) -> (i32, i32, i32) {
    %c0_i32 = arith.constant 0 : i32
    %c0_i32_0 = arith.constant 0 : i32
    return %arg0, %c0_i32, %arg1 : i32, i32, i32
  }
  func.func @transform_1(%arg0: i32, %arg1: i32) -> (i32, i32) {
    %c0_i32 = arith.constant 0 : i32
    %c0_i32_0 = arith.constant 0 : i32
    %c0_i32_1 = arith.constant 0 : i32
    return %c0_i32, %c0_i32_0 : i32, i32
  }
  func.func @transform_2(%arg0: i32, %arg1: i32) -> (i32, i32) {
    %c0_i32 = arith.constant 0 : i32
    %c0_i32_0 = arith.constant 0 : i32
    %c0_i32_1 = arith.constant 0 : i32
    return %c0_i32, %c0_i32_0 : i32, i32
  }
  func.func @transform_3(%arg0: i32, %arg1: i32) -> (i32, i32) {
    %c0_i32 = arith.constant 0 : i32
    %c0_i32_0 = arith.constant 0 : i32
    %c0_i32_1 = arith.constant 0 : i32
    return %c0_i32, %c0_i32_0 : i32, i32
  }
  func.func @transform_4(%arg0: i32, %arg1: i32) -> (i32, i32) {
    %c0_i32 = arith.constant 0 : i32
    %c0_i32_0 = arith.constant 0 : i32
    %c0_i32_1 = arith.constant 0 : i32
    return %c0_i32, %c0_i32_0 : i32, i32
  }
  func.func @transform_5(%arg0: i32, %arg1: i32) -> (i32, i32) {
    %c0_i32 = arith.constant 0 : i32
    %c0_i32_0 = arith.constant 0 : i32
    %c0_i32_1 = arith.constant 0 : i32
    return %c0_i32, %c0_i32_0 : i32, i32
  }
  func.func @transform_6(%arg0: i32, %arg1: i32) -> (i32, i32) {
    %c0_i32 = arith.constant 0 : i32
    %c0_i32_0 = arith.constant 0 : i32
    %c0_i32_1 = arith.constant 0 : i32
    return %c0_i32, %c0_i32_0 : i32, i32
  }
  func.func @transform_7(%arg0: i32, %arg1: i32) -> (i32, i32, i32) {
    %c0_i32 = arith.constant 0 : i32
    %c0_i32_0 = arith.constant 0 : i32
    return %arg0, %c0_i32, %arg1 : i32, i32, i32
  }
}

</mosaic_0001>

<bundles_post_ra>
// kernel: colornet_forward.2
= control target key start
LH: loop header
LB: loop body
LE: loop exit
PB: predicated region body
PF: predicated region fallthrough
CT: control target
= control target key end

     0   :  { %s2839_s21 = smov 0   ;;  %s3198_s0 = inlined_call_operand.vmem [shape: bf16[2,3,362], index: 0, kind: input, shape index: {}]   ;;  %s3199_s1 = inlined_call_operand.vmem [shape: bf16[9,16,3], index: 1, kind: input, shape index: {}]   ;;  %s3200_s2 = inlined_call_operand.vmem [shape: f32[16,1], index: 2, kind: input, shape index: {}]   ;;  %s3201_s3 = inlined_call_operand.vmem [shape: f32[1,324], index: 3, kind: input, shape index: {}]   ;;  %s3202_s4 = inlined_call_operand.vmem [shape: bf16[9,8,16], index: 4, kind: input, shape index: {}]   ;;  %s3203_s5 = inlined_call_operand.vmem [shape: f32[8,1], index: 5, kind: input, shape index: {}]   ;;  %s3204_s6 = inlined_call_operand.vmem [shape: f32[2,8,324], index: 6, kind: output, shape index: {}]  }
   0x1 LB: > { %s2485_s22 = sadd.s32 4294967295, %s2788_s21   ;;  %p2489_p0 = scmp.ge.s32.totalorder %s2788_s21, 1  ;;  %s2788_s21 = sphi %s2839_s21, %s16_s21  }
   0x2   : > { %p212_p1 = scmp.lt.s32.totalorder %s2788_s21, 3 }
   0x4   : > { %p213_p2 = pnand %p2489_p0, %p212_p1 }
   0x5   : > { %p242_p3 = scmp.lt.s32.totalorder (!%p213_p2), %s2485_s22, 1  ;;  %v269_v0 = vlaneseq (!%p213_p2)  ;;  %v2790_v1 = vmov (!%p213_p2), 1983009808   ;;  %v2791_v5 = vmov (!%p213_p2), 0.0   ;;  %vm2792_vm0 = vmmov (!%p213_p2), 0   ;;  %s2793_s27 = smov (!%p213_p2), 127  }
   0x6   : > { %216 = sbr.rel (%p213_p2) target bundleno = 998 (0x3e6), region = 44  ;;  %v267_v2 = vunpack.c.l.s4 (!%p213_p2), %v2790_v1  ;;  %2599 = vmatprep.subr.bf16.mxu1 (!%p213_p2), %v2791_v5  ;;  %2601 = vmatprep.mubr.msk.bf16.mxu1 (!%p213_p2), %vm2792_vm0, %v2791_v5  ;;  %s2794_s28 = smov (!%p213_p2), 126   ;;  %v2795_v21 = vmov (!%p213_p2), 0   ;;  %v1451_v48 = vld [vmem:[%s3200_s2] sm:$0xff] (!%p213_p2)  ;;  %v1452_v49 = vld [vmem:[%s3200_s2 + $0x8] sm:$0xff] (!%p213_p2)  ;;  %vm294_vm1 = vcmask (!%p213_p2), 1040384  }
   0x7   : > { %v2849_v3 = vshrl.u32 (!%p213_p2), %v269_v0, 7  ;;  %339 = vmatprep.mubr.bf16.mxu0 (!%p213_p2), %v2795_v21  ;;  %2763 = vset.pattern.permute.xlu0 (!%p213_p2), %v2795_v21  ;;  %s2796_s29 = smov (!%p213_p2), 110   ;;  %s2797_s30 = smov (!%p213_p2), 109   ;;  %vm295_vm2 = vcmask (!%p213_p2), 1041408   ;;  %v2802_v51 = vmov (!%p213_p2), 65535   ;;  %vm287_vm3 = vcmask (!%p213_p2), 1039360  }
   0x8   : > { %v268_v4 = vunpack.c.0.s8 (!%p213_p2), %v267_v2  ;;  %2764 = vset.pattern.permute.xlu1 (!%p213_p2), %v2795_v21  ;;  %s2798_s7 = smov (!%p213_p2), 108   ;;  %s2799_s8 = smov (!%p213_p2), 92   ;;  %v296_v52 = vsel (!%p213_p2), %vm294_vm1, 4294967295, %v2802_v51  ;;  %v2773_v61 = vld [vmem:[%s3199_s1 + $0x8] sm:$0xff] (!%p213_p2)   ;;  %vm524_vm4 = vcmask (!%p213_p2), 1031168   ;;  %vm290_vm5 = vcmask (!%p213_p2), 23552  }
   0x9   : > { %s2800_s9 = smov (!%p213_p2), 91   ;;  %s2801_s10 = smov (!%p213_p2), 90   ;;  %v2931_v54 = vsel (!%p213_p2), %vm295_vm2, %v296_v52, 0  ;;  %vm661_vm6 = vcmask (!%p213_p2), 900096   ;;  %vm798_vm7 = vcmask (!%p213_p2), 891904   ;;  %vm935_vm8 = vcmask (!%p213_p2), 883712  }
   0xa   : > { %v2854_v6 = vsub.s32 (!%p213_p2), %v268_v4, %v2849_v3  ;;  %vm1072_vm9 = vcmask (!%p213_p2), 752640   ;;  %vm1209_vm10 = vcmask (!%p213_p2), 744448   ;;  %vm1346_vm11 = vcmask (!%p213_p2), 736256  }
   0xb   : > { %vm1498_vm12 = vcmask (!%p213_p2), 154624   ;;  %vm1500_vm13 = vcmask (!%p213_p2), 868024   ;;  %vm1520_vm14 = vcmask (!%p213_p2), 1047704   ;;  %vm1523_vm15 = vcmask (!%p213_p2), 711680  }
   0xc   : > { %1499 = vst.msk [vmem:[#allocation2] sm:$0xff] (!%p213_p2), %vm1498_vm12, %v2795_v21  ;;  %vm1545_vm1 = vcmask (!%p213_p2), 130048  }
   0xd   : > { %s3206_s22 = smov (!%p242_p3, %s2485_s22), 1  ;;  %1501 = vst.msk [vmem:[#allocation2 + $0x10] sm:$0xff] %vm1500_vm13, %v2795_v21 }
   0xe   : > { %s2739_s23 = smul.u32 6, %s3206_s22 }
   0xf   : > { %s2740_s20 = smul.u32 24, %s3206_s22 }
  0x10   : > { %s2859_s26 = scalar_lea.vmem %s3198_s0, %s2739_s23  ;;  %s2803_s23 = smov 19  }
  0x11   : > { %v255_v7 = vld [vmem:[%s2859_s26] sm:$0x3f] }
  0x12   : > { %v495_v8 = vld [vmem:[%s2859_s26] sm:$0x3f]  ;;  %v2866_v9 = vrot.slane %v255_v7, %v2854_v6  ;;  %v265_v10 = vcombine.high %v255_v7, %v255_v7 }
  0x13   : > { %v509_v11 = vrot.slane %v495_v8, %v2854_v6  ;;  %v632_v14 = vld [vmem:[%s2859_s26] sm:$0x3f]  ;;  %v502_v16 = vcombine.high %v495_v8, %v495_v8 }
  0x14   : > { %281 = vrot.lane.b32.xlu1 %v2866_v9, %s2793_s27  ;;  %v2873_v12 = vcombine.high %v2866_v9, %v2866_v9  ;;  %v2879_v15 = vrot.slane %v265_v10, %v2854_v6  ;;  %v639_v17 = vcombine.high %v632_v14, %v632_v14  ;;  %v769_v18 = vld [vmem:[%s2859_s26] sm:$0x3f]  ;;  %v646_v20 = vrot.slane %v632_v14, %v2854_v6 }
  0x15   : > { %v517_v13 = vcombine.high %v509_v11, %v509_v11  ;;  %v516_v19 = vrot.slane %v502_v16, %v2854_v6  ;;  %v783_v23 = vrot.slane %v769_v18, %v2854_v6  ;;  %v906_v26 = vld [vmem:[%s2859_s26] sm:$0x3f]  ;;  %v776_v27 = vcombine.high %v769_v18, %v769_v18 }
  0x16   : > { %283 = vrot.lane.b32.xlu0 %v2873_v12, %s2793_s27  ;;  %v653_v22 = vrot.slane %v639_v17, %v2854_v6  ;;  %v654_v24 = vcombine.high %v646_v20, %v646_v20  ;;  %v913_v28 = vcombine.high %v906_v26, %v906_v26  ;;  %v1043_v29 = vld [vmem:[%s2859_s26] sm:$0x3f]  ;;  %v920_v31 = vrot.slane %v906_v26, %v2854_v6 }
  0x17   : > { %v791_v25 = vcombine.high %v783_v23, %v783_v23  ;;  %v790_v30 = vrot.slane %v776_v27, %v2854_v6  ;;  %v1057_v33 = vrot.slane %v1043_v29, %v2854_v6  ;;  %v1180_v36 = vld [vmem:[%s2859_s26] sm:$0x3f]  ;;  %v1050_v37 = vcombine.high %v1043_v29, %v1043_v29 }
  0x18   : > { %520 = vrot.lane.b32.xlu1 %v517_v13, %s2794_s28  ;;  %v927_v32 = vrot.slane %v913_v28, %v2854_v6  ;;  %v928_v34 = vcombine.high %v920_v31, %v920_v31  ;;  %v1187_v38 = vcombine.high %v1180_v36, %v1180_v36  ;;  %v1194_v40 = vrot.slane %v1180_v36, %v2854_v6  ;;  %v1317_v41 = vld [vmem:[%s2859_s26] sm:$0x3f] }
  0x19   : > { %v1065_v35 = vcombine.high %v1057_v33, %v1057_v33  ;;  %v1064_v39 = vrot.slane %v1050_v37, %v2854_v6  ;;  %v1331_v43 = vrot.slane %v1317_v41, %v2854_v6  ;;  %v1324_v46 = vcombine.high %v1317_v41, %v1317_v41  ;;  %v2774_v8 = vld [vmem:[%s3199_s1] sm:$0xff]  }
  0x1a   : > { %285 = vrot.lane.b32.xlu0 %v2879_v15, %s2793_s27  ;;  %v1201_v42 = vrot.slane %v1187_v38, %v2854_v6  ;;  %v1202_v44 = vcombine.high %v1194_v40, %v1194_v40  ;;  %v403_v59 = vand.u32 %v2931_v54, %v2873_v12  ;;  %v406_v63 = vand.u32 %v2931_v54, %v2879_v15  ;;  %v2775_v15 = vld [vmem:[%s3199_s1 + $0x10] sm:$0xff]  }
  0x1b   : > { %v1339_v45 = vcombine.high %v1331_v43, %v1331_v43  ;;  %v1338_v47 = vrot.slane %v1324_v46, %v2854_v6  ;;  %v400_v2 = vand.u32 %v2931_v54, %v2866_v9  ;;  %v2779_v46 = vld [vmem:[%s3199_s1 + $0x30] sm:$0xff]  }
  0x1c   : > { %518 = vrot.lane.b32.xlu1 %v509_v11, %s2794_s28 }
  0x1e   : > { %522 = vrot.lane.b32.xlu0 %v516_v19, %s2794_s28 }
  0x20   : > { %659 = vrot.lane.b32.xlu1 %v653_v22, %s2796_s29 }
  0x22   : > { %657 = vrot.lane.b32.xlu0 %v654_v24, %s2796_s29 }
  0x24   : > { %794 = vrot.lane.b32.xlu1 %v791_v25, %s2797_s30 }
  0x26   : > { %655 = vrot.lane.b32.xlu0 %v646_v20, %s2796_s29 }
  0x28   : > { %792 = vrot.lane.b32.xlu1 %v783_v23, %s2797_s30  ;;  %v2776_v23 = vld [vmem:[%s3199_s1 + $0x18] sm:$0xff]  }
  0x2a   : > { %796 = vrot.lane.b32.xlu0 %v790_v30, %s2797_s30 }
  0x2c   : > { %933 = vrot.lane.b32.xlu1 %v927_v32, %s2798_s7 }
  0x2e   : > { %931 = vrot.lane.b32.xlu0 %v928_v34, %s2798_s7 }
  0x30   : > { %1068 = vrot.lane.b32.xlu1 %v1065_v35, %s2799_s8 }
  0x32   : > { %929 = vrot.lane.b32.xlu0 %v920_v31, %s2798_s7  ;;  %v2777_v31 = vld [vmem:[%s3199_s1 + $0x20] sm:$0xff]  }
  0x34   : > { %1066 = vrot.lane.b32.xlu1 %v1057_v33, %s2799_s8 }
  0x36   : > { %1070 = vrot.lane.b32.xlu0 %v1064_v39, %s2799_s8 }
  0x38   : > { %1207 = vrot.lane.b32.xlu1 %v1201_v42, %s2800_s9 }
  0x3a   : > { %1205 = vrot.lane.b32.xlu0 %v1202_v44, %s2800_s9 }
  0x3c   : > { %1342 = vrot.lane.b32.xlu1 %v1339_v45, %s2801_s10 }
  0x3e   : > { %1203 = vrot.lane.b32.xlu0 %v1194_v40, %s2800_s9  ;;  %v2778_v40 = vld [vmem:[%s3199_s1 + $0x28] sm:$0xff]  }
  0x40   : > { %1340 = vrot.lane.b32.xlu1 %v1331_v43, %s2801_s10 }
  0x42   : > { %1344 = vrot.lane.b32.xlu0 %v1338_v47, %s2801_s10 }
  0x44   : > { %1460 = vperm.xlu1 %2764, %v1452_v49  }
  0x46   : > { %1455 = vperm.xlu0 %2763, %v1451_v48  }
  0x86   : > { %v282_v53 = vpop.permute.xlu1 %281 }
  0x88   : > { %v284_v50 = vpop.permute.xlu0 %283 }
  0x89   : > { %v288_v55 = vsel %vm287_vm3, %v282_v53, %v284_v50  ;;  %v2780_v53 = vld [vmem:[%s3199_s1 + $0x38] sm:$0xff]  }
  0x8a   : > { %v521_v62 = vpop.permute.xlu1 %520  ;;  %v299_v0 = vand.u32 %v2931_v54, %v288_v55 }
  0x8c   : > { %v286_v56 = vpop.permute.xlu0 %285 }
  0x8d   : > { %v305_v57 = vand.u32 %v2931_v54, %v286_v56  ;;  %v289_v58 = vsel %vm287_vm3, %v284_v50, %v286_v56 }
  0x8e   : > { %v302_v60 = vand.u32 %v2931_v54, %v289_v58  ;;  %v519_v7 = vpop.permute.xlu1 %518 }
  0x8f   : > { %2600 = vmatpush3.bf16.msra.mxu1 %v305_v57  ;;  %v525_v11 = vsel %vm524_vm4, %v519_v7, %v521_v62 }
  0x90   : > { %307 = vmatprep.subr.bf16.mxu0 %v302_v60  ;;  %2605 = vmatprep.subr.bf16.mxu1 %v2791_v5  ;;  %v523_v1 = vpop.permute.xlu0 %522  ;;  %v531_v14 = vand.u32 %v525_v11, %v2931_v54  ;;  %v2781_v60 = vld [vmem:[%s3199_s1 + $0x40] sm:$0xff]  }
  0x91   : > { %308 = vmatpush1.bf16.msra.mxu0 %v299_v0  ;;  %v526_v4 = vsel %vm524_vm4, %v521_v62, %v523_v1  ;;  %v537_v9 = vand.u32 %v523_v1, %v2931_v54 }
  0x92   : > { %2602 = vmatmul.mubr.msk.bf16.vlgmr.msra.gmra.mrb[0].mxu1 %vm290_vm5, %v2773_v61  ;;  %408 = vmatprep.subr.bf16.mxu0 %v403_v59  ;;  %v534_v6 = vand.u32 %v526_v4, %v2931_v54  ;;  %v660_v12 = vpop.permute.xlu1 %659 }
  0x93   : > { %2606 = vmatpush3.bf16.msra.mxu1 %v406_v63  ;;  %2607 = vmatprep.mubr.msk.bf16.mxu1 %vm2792_vm0, %v2791_v5  ;;  %v674_v18 = vand.u32 %v660_v12, %v2931_v54 }
  0x94   : > { %2495 = vmatmul.mubr.msk.bf16.vlgmr.msra.gmra.mrb[0].mxu0 %vm290_vm5, %v2773_v61  ;;  %2611 = vmatprep.subr.bf16.mxu1 %v2791_v5  ;;  %v658_v10 = vpop.permute.xlu0 %657 }
  0x95   : > { %409 = vmatpush1.bf16.msra.mxu0 %v400_v2  ;;  %440 = vmatprep.mubr.bf16.mxu0 %v2795_v21  ;;  %v663_v13 = vsel %vm661_vm6, %v658_v10, %v660_v12 }
  0x96   : > { %539 = vmatprep.subr.bf16.mxu0 %v534_v6  ;;  %v671_v16 = vand.u32 %v663_v13, %v2931_v54  ;;  %v795_v19 = vpop.permute.xlu1 %794 }
  0x98   : > { %v656_v17 = vpop.permute.xlu0 %655 }
  0x99   : > { %v662_v22 = vsel %vm661_vm6, %v656_v17, %v658_v10 }
  0x9a   : > { %2608 = vmatmul.mubr.msk.bf16.vlgmr.msra.gmra.mrb[4].mxu1 %vm290_vm5, %v2774_v8  ;;  %v793_v24 = vpop.permute.xlu1 %792  ;;  %v668_v28 = vand.u32 %v662_v22, %v2931_v54 }
  0x9b   : > { %2612 = vmatpush3.bf16.msra.mxu1 %v537_v9  ;;  %2613 = vmatprep.mubr.msk.bf16.mxu1 %vm2792_vm0, %v2791_v5  ;;  %v799_v35 = vsel %vm798_vm7, %v793_v24, %v795_v19 }
  0x9c   : > { %2617 = vmatprep.subr.bf16.mxu1 %v2791_v5  ;;  %v797_v20 = vpop.permute.xlu0 %796  ;;  %v805_v38 = vand.u32 %v799_v35, %v2931_v54 }
  0x9d   : > { %v800_v25 = vsel %vm798_vm7, %v795_v19, %v797_v20  ;;  %v811_v26 = vand.u32 %v797_v20, %v2931_v54 }
  0x9e   : > { %v808_v29 = vand.u32 %v800_v25, %v2931_v54  ;;  %v934_v30 = vpop.permute.xlu1 %933 }
  0x9f   : > { %v948_v33 = vand.u32 %v934_v30, %v2931_v54 }
  0xa0   : > { %2498 = vmatmul.mubr.msk.bf16.vlgmr.msra.gmra.mrb[0].mxu0 %vm290_vm5, %v2774_v8  ;;  %v932_v27 = vpop.permute.xlu0 %931 }
  0xa1   : > { %540 = vmatpush1.bf16.msra.mxu0 %v531_v14  ;;  %571 = vmatprep.mubr.bf16.mxu0 %v2795_v21  ;;  %v937_v36 = vsel %vm935_vm8, %v932_v27, %v934_v30 }
  0xa2   : > { %2614 = vmatmul.mubr.msk.bf16.vlgmr.msra.gmra.mrb[8].mxu1 %vm290_vm5, %v2775_v15  ;;  %676 = vmatprep.subr.bf16.mxu0 %v671_v16  ;;  %v1069_v34 = vpop.permute.xlu1 %1068  ;;  %v945_v39 = vand.u32 %v937_v36, %v2931_v54 }
  0xa3   : > { %2618 = vmatpush3.bf16.msra.mxu1 %v674_v18  ;;  %2619 = vmatprep.mubr.msk.bf16.mxu1 %vm2792_vm0, %v2791_v5 }
  0xa4   : > { %2623 = vmatprep.subr.bf16.mxu1 %v2791_v5  ;;  %v930_v32 = vpop.permute.xlu0 %929 }
  0xa5   : > { %v936_v45 = vsel %vm935_vm8, %v930_v32, %v932_v27 }
  0xa6   : > { %v1067_v41 = vpop.permute.xlu1 %1066  ;;  %v942_v50 = vand.u32 %v936_v45, %v2931_v54 }
  0xa7   : > { %v1073_v56 = vsel %vm1072_vm9, %v1067_v41, %v1069_v34 }
  0xa8   : > { %v1071_v37 = vpop.permute.xlu0 %1070  ;;  %v1079_v58 = vand.u32 %v1073_v56, %v2931_v54 }
  0xa9   : > { %v1085_v42 = vand.u32 %v1071_v37, %v2931_v54  ;;  %v1074_v48 = vsel %vm1072_vm9, %v1069_v34, %v1071_v37 }
  0xaa   : > { %2620 = vmatmul.mubr.msk.bf16.vlgmr.msra.gmra.mrb[12].mxu1 %vm290_vm5, %v2776_v23  ;;  %v1208_v44 = vpop.permute.xlu1 %1207  ;;  %v1082_v51 = vand.u32 %v1074_v48, %v2931_v54 }
  0xab   : > { %2624 = vmatpush3.bf16.msra.mxu1 %v811_v26  ;;  %2625 = vmatprep.mubr.msk.bf16.mxu1 %vm2792_vm0, %v2791_v5  ;;  %v1222_v49 = vand.u32 %v1208_v44, %v2931_v54 }
  0xac   : > { %2503 = vmatmul.mubr.msk.bf16.vlgmr.msra.gmra.mrb[0].mxu0 %vm290_vm5, %v2775_v15  ;;  %2629 = vmatprep.subr.bf16.mxu1 %v2791_v5  ;;  %v1206_v43 = vpop.permute.xlu0 %1205 }
  0xad   : > { %677 = vmatpush1.bf16.msra.mxu0 %v668_v28  ;;  %708 = vmatprep.mubr.bf16.mxu0 %v2795_v21  ;;  %v1211_v57 = vsel %vm1209_vm10, %v1206_v43, %v1208_v44 }
  0xae   : > { %813 = vmatprep.subr.bf16.mxu0 %v808_v29  ;;  %v1219_v59 = vand.u32 %v1211_v57, %v2931_v54  ;;  %v1343_v62 = vpop.permute.xlu1 %1342 }
  0xb0   : > { %v1204_v47 = vpop.permute.xlu0 %1203 }
  0xb1   : > { %v1210_v61 = vsel %vm1209_vm10, %v1204_v47, %v1206_v43 }
  0xb2   : > { %2626 = vmatmul.mubr.msk.bf16.vlgmr.msra.gmra.mrb[16].mxu1 %vm290_vm5, %v2777_v31  ;;  %v1216_v0 = vand.u32 %v1210_v61, %v2931_v54  ;;  %v1341_v2 = vpop.permute.xlu1 %1340  ;;  %v1475_v61 = vld [vmem:[%s3201_s3] sm:$0x7] }
  0xb3   : > { %2630 = vmatpush3.bf16.msra.mxu1 %v948_v33  ;;  %2631 = vmatprep.mubr.msk.bf16.mxu1 %vm2792_vm0, %v2791_v5  ;;  %v1347_v4 = vsel %vm1346_vm11, %v1341_v2, %v1343_v62 }
  0xb4   : > { %2635 = vmatprep.subr.bf16.mxu1 %v2791_v5  ;;  %v1345_v52 = vpop.permute.xlu0 %1344  ;;  %v1353_v6 = vand.u32 %v1347_v4, %v2931_v54 }
  0xb5   : > { %v1359_v55 = vand.u32 %v1345_v52, %v2931_v54  ;;  %v1348_v63 = vsel %vm1346_vm11, %v1343_v62, %v1345_v52 }
  0xb6   : > { %v1356_v1 = vand.u32 %v1348_v63, %v2931_v54 }
  0xb8   : > { %2508 = vmatmul.mubr.msk.bf16.vlgmr.msra.gmra.mrb[0].mxu0 %vm290_vm5, %v2776_v23 }
  0xb9   : > { %814 = vmatpush1.bf16.msra.mxu0 %v805_v38  ;;  %845 = vmatprep.mubr.bf16.mxu0 %v2795_v21 }
  0xba   : > { %2632 = vmatmul.mubr.msk.bf16.vlgmr.msra.gmra.mrb[20].mxu1 %vm290_vm5, %v2778_v40  ;;  %950 = vmatprep.subr.bf16.mxu0 %v945_v39 }
  0xbb   : > { %2636 = vmatpush3.bf16.msra.mxu1 %v1085_v42  ;;  %2637 = vmatprep.mubr.msk.bf16.mxu1 %vm2792_vm0, %v2791_v5 }
  0xbc   : > { %2641 = vmatprep.subr.bf16.mxu1 %v2791_v5 }
  0xc2   : > { %2638 = vmatmul.mubr.msk.bf16.vlgmr.msra.gmra.mrb[24].mxu1 %vm290_vm5, %v2779_v46 }
  0xc3   : > { %2642 = vmatpush3.bf16.msra.mxu1 %v1222_v49  ;;  %2643 = vmatprep.mubr.msk.bf16.mxu1 %vm2792_vm0, %v2791_v5 }
  0xc4   : > { %2513 = vmatmul.mubr.msk.bf16.vlgmr.msra.gmra.mrb[0].mxu0 %vm290_vm5, %v2777_v31  ;;  %2647 = vmatprep.subr.bf16.mxu1 %v2791_v5 }
  0xc5   : > { %951 = vmatpush1.bf16.msra.mxu0 %v942_v50  ;;  %982 = vmatprep.mubr.bf16.mxu0 %v2795_v21 }
  0xc6   : > { %1087 = vmatprep.subr.bf16.mxu0 %v1082_v51 }
  0xca   : > { %2644 = vmatmul.mubr.msk.bf16.vlgmr.msra.gmra.mrb[28].mxu1 %vm290_vm5, %v2780_v53 }
  0xcb   : > { %2648 = vmatpush3.bf16.msra.mxu1 %v1359_v55  ;;  %2649 = vmatprep.mubr.msk.bf16.mxu1 %vm2792_vm0, %v2791_v5  ;;  %v1456_v55 = vpop.permute.xlu0 %1455 }
  0xcc   : > { %2653 = vmatprep.subr.bf16.mxu1 %v2791_v5 }
  0xd0   : > { %2518 = vmatmul.mubr.msk.bf16.vlgmr.msra.gmra.mrb[0].mxu0 %vm290_vm5, %v2778_v40 }
  0xd1   : > { %1088 = vmatpush1.bf16.msra.mxu0 %v1079_v58  ;;  %1119 = vmatprep.mubr.bf16.mxu0 %v2795_v21  ;;  %v1487_v58 = vsub.s32 2, %v2849_v3 }
  0xd2   : > { %2650 = vmatmul.mubr.msk.bf16.vlgmr.msra.gmra.mrb[32].mxu1 %vm290_vm5, %v2781_v60  ;;  %1224 = vmatprep.subr.bf16.mxu0 %v1219_v59 }
  0xd3   : > { %2655 = vmatprep.mubr.msk.bf16.mxu1 %vm2792_vm0, %v2791_v5  ;;  %v1488_v4 = vrot.slane %v1475_v61, %v1487_v58 }
  0xdc   : > { %2523 = vmatmul.mubr.msk.bf16.vlgmr.msra.gmra.mrb[0].mxu0 %vm290_vm5, %v2779_v46 }
  0xdd   : > { %1225 = vmatpush1.bf16.msra.mxu0 %v1216_v0  ;;  %1256 = vmatprep.mubr.bf16.mxu0 %v2795_v21 }
  0xde   : > { %1361 = vmatprep.subr.bf16.mxu0 %v1356_v1 }
  0xe8   : > { %2528 = vmatmul.mubr.msk.bf16.vlgmr.msra.gmra.mrb[0].mxu0 %vm290_vm5, %v2780_v53 }
  0xe9   : > { %1362 = vmatpush1.bf16.msra.mxu0 %v1353_v6  ;;  %1393 = vmatprep.mubr.bf16.mxu0 %v2795_v21 }
  0xf4   : > { %2533 = vmatmul.mubr.msk.bf16.vlgmr.msra.gmra.mrb[0].mxu0 %vm290_vm5, %v2781_v60  ;;  %v1461_v60 = vpop.permute.xlu1 %1460 }
  0xf5   : > { %1581 = vmatprep.mubr.bf16.mxu0 %v2795_v21 }
 0x165   : > { %v384_v7 = vpop.f32.mrb[0].mxu1 }
 0x166   : > { %v2603_v8 = vpop.f32.mrb[1].mxu1 }
 0x167   : > { %v387_v9 = vpop.f32.mrb[2].mxu1 }
 0x168   : > { %v2604_v10 = vpop.f32.mrb[3].mxu1 }
 0x169   : > { %v1479_v10 = vsub.s32 0, %v2849_v3 }
 0x16d   : > { %v485_v11 = vpop.f32.mrb[4].mxu1 }
 0x16e   : > { %v486_v12 = vadd.f32 %v485_v11, %v384_v7  ;;  %v2609_v54 = vpop.f32.mrb[5].mxu1 }
 0x16f   : > { %v488_v13 = vpop.f32.mrb[6].mxu1 }
 0x170   : > { %v489_v14 = vadd.f32 %v488_v13, %v387_v9  ;;  %v2610_v15 = vpop.f32.mrb[7].mxu1 }
 0x175   : > { %v616_v16 = vpop.f32.mrb[8].mxu1 }
 0x176   : > { %v625_v17 = vadd.f32 %v616_v16, %v486_v12  ;;  %v2615_v18 = vpop.f32.mrb[9].mxu1  ;;  %v1483_v12 = vsub.s32 1, %v2849_v3 }
 0x177   : > { %v619_v19 = vpop.f32.mrb[10].mxu1 }
 0x178   : > { %v628_v20 = vadd.f32 %v619_v19, %v489_v14  ;;  %v2616_v22 = vpop.f32.mrb[11].mxu1 }
 0x179   : > { %v1484_v22 = vrot.slane %v1475_v61, %v1483_v12  ;;  %v2549_v12 = vld [vmem:[%s3202_s4 + $0x14] sm:$0xf] }
 0x17d   : > { %v753_v23 = vpop.f32.mrb[12].mxu1 }
 0x17e   : > { %v762_v24 = vadd.f32 %v753_v23, %v625_v17  ;;  %v2621_v25 = vpop.f32.mrb[13].mxu1  ;;  %v1480_v17 = vrot.slane %v1475_v61, %v1479_v10 }
 0x17f   : > { %v756_v26 = vpop.f32.mrb[14].mxu1 }
 0x180   : > { %v765_v27 = vadd.f32 %v756_v26, %v628_v20  ;;  %v2622_v28 = vpop.f32.mrb[15].mxu1 }
 0x185   : > { %v890_v29 = vpop.f32.mrb[16].mxu1 }
 0x186   : > { %v899_v30 = vadd.f32 %v890_v29, %v762_v24  ;;  %v2627_v31 = vpop.f32.mrb[17].mxu1 }
 0x187   : > { %v893_v32 = vpop.f32.mrb[18].mxu1 }
 0x188   : > { %v902_v33 = vadd.f32 %v893_v32, %v765_v27  ;;  %v2628_v34 = vpop.f32.mrb[19].mxu1 }
 0x18d   : > { %v1027_v35 = vpop.f32.mrb[20].mxu1 }
 0x18e   : > { %v1036_v36 = vadd.f32 %v1027_v35, %v899_v30  ;;  %v2633_v37 = vpop.f32.mrb[21].mxu1 }
 0x18f   : > { %v1030_v38 = vpop.f32.mrb[22].mxu1 }
 0x190   : > { %v1039_v39 = vadd.f32 %v1030_v38, %v902_v33  ;;  %v2634_v40 = vpop.f32.mrb[23].mxu1  ;;  %v2414_v38 = vld [vmem:[%s3203_s5] sm:$0xff] }
 0x195   : > { %v1164_v41 = vpop.f32.mrb[24].mxu1 }
 0x196   : > { %v1173_v42 = vadd.f32 %v1164_v41, %v1036_v36  ;;  %v2639_v43 = vpop.f32.mrb[25].mxu1 }
 0x197   : > { %v1167_v44 = vpop.f32.mrb[26].mxu1 }
 0x198   : > { %v1176_v45 = vadd.f32 %v1167_v44, %v1039_v39  ;;  %v2640_v46 = vpop.f32.mrb[27].mxu1  ;;  %v2535_v44 = vld [vmem:[%s3202_s4 + $0x4] sm:$0xf] }
 0x19d   : > { %v1301_v47 = vpop.f32.mrb[28].mxu1 }
 0x19e   : > { %v1310_v48 = vadd.f32 %v1301_v47, %v1173_v42  ;;  %v2645_v49 = vpop.f32.mrb[29].mxu1 }
 0x19f   : > { %v1304_v50 = vpop.f32.mrb[30].mxu1 }
 0x1a0   : > { %v1313_v51 = vadd.f32 %v1304_v50, %v1176_v45  ;;  %v2646_v52 = vpop.f32.mrb[31].mxu1  ;;  %v1525_v50 = vld [vmem:[%s3202_s4] sm:$0xf] }
 0x1a5   : > { %v1438_v53 = vpop.f32.mrb[32].mxu1 }
 0x1a6   : > { %v1447_v56 = vadd.f32 %v1438_v53, %v1310_v48  ;;  %v2651_v57 = vpop.f32.mrb[33].mxu1 }
 0x1a7   : > { %v1441_v59 = vpop.f32.mrb[34].mxu1  ;;  %v2540_v57 = vld [vmem:[%s3202_s4 + $0x8] sm:$0xf] }
 0x1a8   : > { %v1465_v62 = vadd.f32 %v1456_v55, %v1447_v56  ;;  %v1450_v63 = vadd.f32 %v1441_v59, %v1313_v51  ;;  %v2652_v0 = vpop.f32.mrb[35].mxu1 }
 0x1aa   : > { %v1471_v1 = vmax.f32 %v1465_v62, 0.0  ;;  %v1468_v2 = vadd.f32 %v1461_v60, %v1450_v63  ;;  %v2543_v63 = vld [vmem:[%s3202_s4 + $0xc] sm:$0xf] }
 0x1ac   : > { %v1474_v6 = vmax.f32 %v1468_v2, 0.0  ;;  %v1494_v7 = vmul.f32 %v1488_v4, %v1471_v1 }
 0x1ae   : > { %v1497_v8 = vmul.f32 %v1488_v4, %v1474_v6 }
 0x1b0   : > { %v1504_v9 = vpack.c.bf16 %v1497_v8, %v1494_v7  ;;  %v2546_v7 = vld [vmem:[%s3202_s4 + $0x10] sm:$0xf] }
 0x1c7   : > { %v1395_v11 = vpop.f32.mrb[0].mxu0 }
 0x1c8   : > { %v1463_v54 = vadd.f32 %v1456_v55, %v1395_v11  ;;  %v1397_v13 = vpop.f32.mrb[1].mxu0 }
 0x1c9   : > { %v1464_v14 = vadd.f32 %v1456_v55, %v1397_v13  ;;  %v1399_v15 = vpop.f32.mrb[2].mxu0 }
 0x1ca   : > { %v1469_v16 = vmax.f32 %v1463_v54, 0.0  ;;  %v1466_v18 = vadd.f32 %v1461_v60, %v1399_v15  ;;  %v1401_v19 = vpop.f32.mrb[3].mxu0 }
 0x1cb   : > { %v1470_v20 = vmax.f32 %v1464_v14, 0.0  ;;  %v1467_v23 = vadd.f32 %v1461_v60, %v1401_v19 }
 0x1cc   : > { %v1472_v24 = vmax.f32 %v1466_v18, 0.0  ;;  %v1492_v26 = vmul.f32 %v1480_v17, %v1469_v16 }
 0x1cd   : > { %v1473_v25 = vmax.f32 %v1467_v23, 0.0  ;;  %v1493_v28 = vmul.f32 %v1484_v22, %v1470_v20  ;;  %v2555_v23 = vld [vmem:[%s3202_s4 + $0x1c] sm:$0xf] }
 0x1ce   : > { %v1495_v27 = vmul.f32 %v1480_v17, %v1472_v24  ;;  %v2552_v17 = vld [vmem:[%s3202_s4 + $0x18] sm:$0xf] }
 0x1cf   : > { %v1496_v3 = vmul.f32 %v1484_v22, %v1473_v25 }
 0x1d0   : > { %v1502_v29 = vpack.c.bf16 %v1495_v27, %v1492_v26  ;;  %v2558_v26 = vld [vmem:[%s3202_s4 + $0x20] sm:$0xf] }
 0x1d1   : > { %v1503_v30 = vpack.c.bf16 %v1496_v3, %v1493_v28 }
 0x1d2   : > { %1508 = vrot.lane.b32.xlu1 %v1502_v29, %s2803_s23 }
 0x1d3   : > { %1510 = vrot.lane.b32.xlu0 %v1503_v30, %s2803_s23 }
 0x1d6   : > { %1512 = vrot.lane.b32.xlu1 %v1504_v9, %s2803_s23 }
 0x244   : > { %v1509_v31 = vpop.permute.xlu1 %1508 }
 0x245   : > { %1521 = vst.msk [vmem:[#allocation2] sm:$0xff] %vm1520_vm14, %v1509_v31  ;;  %v1511_v32 = vpop.permute.xlu0 %1510 }
 0x246   : > { %v1515_v33 = vsel %vm1498_vm12, %v1509_v31, %v1511_v32 }
 0x247   : > { %1536 = vrot.lane.b32.xlu0 %v1515_v33, %s2793_s27 }
 0x248   : > { %v1513_v34 = vpop.permute.xlu1 %1512 }
 0x249   : > { %v1516_v35 = vsel %vm1498_vm12, %v1511_v32, %v1513_v34 }
 0x24a   : > { %1524 = vst.msk [vmem:[#allocation2 + $0x10] sm:$0xff] %vm1523_vm15, %v1516_v35 }
 0x24c   : > { %v1526_v36 = vld [vmem:[#allocation2] sm:$0xff] }
 0x24d   : > { %1534 = vrot.lane.b32.xlu0 %v1526_v36, %s2793_s27 }
 0x251   : > { %v1528_v37 = vld [vmem:[#allocation2 + $0x10] sm:$0xff] }
 0x252   : > { %1538 = vrot.lane.b32.xlu1 %v1528_v37, %s2793_s27  ;;  %1720 = vrot.lane.b32.xlu0 %v1528_v37, %s2794_s28 }
 0x256   : > { %1718 = vrot.lane.b32.xlu1 %v1515_v33, %s2794_s28  ;;  %1818 = vrot.lane.b32.xlu0 %v1515_v33, %s2796_s29 }
 0x25a   : > { %1716 = vrot.lane.b32.xlu1 %v1526_v36, %s2794_s28  ;;  %1816 = vrot.lane.b32.xlu0 %v1526_v36, %s2796_s29  ;;  %s251_s28 = scalar_lea.vmem %s3204_s6, %s2740_s20 }
 0x25e   : > { %1820 = vrot.lane.b32.xlu1 %v1528_v37, %s2796_s29  ;;  %1920 = vrot.lane.b32.xlu0 %v1528_v37, %s2797_s30 }
 0x262   : > { %1918 = vrot.lane.b32.xlu1 %v1515_v33, %s2797_s30  ;;  %2018 = vrot.lane.b32.xlu0 %v1515_v33, %s2798_s7 }
 0x266   : > { %1916 = vrot.lane.b32.xlu1 %v1526_v36, %s2797_s30  ;;  %2016 = vrot.lane.b32.xlu0 %v1526_v36, %s2798_s7 }
 0x26a   : > { %2020 = vrot.lane.b32.xlu1 %v1528_v37, %s2798_s7  ;;  %2120 = vrot.lane.b32.xlu0 %v1528_v37, %s2799_s8 }
 0x26e   : > { %2118 = vrot.lane.b32.xlu1 %v1515_v33, %s2799_s8  ;;  %2218 = vrot.lane.b32.xlu0 %v1515_v33, %s2800_s9 }
 0x272   : > { %2116 = vrot.lane.b32.xlu1 %v1526_v36, %s2799_s8  ;;  %2216 = vrot.lane.b32.xlu0 %v1526_v36, %s2800_s9 }
 0x276   : > { %2220 = vrot.lane.b32.xlu1 %v1528_v37, %s2800_s9  ;;  %2320 = vrot.lane.b32.xlu0 %v1528_v37, %s2801_s10 }
 0x27a   : > { %2318 = vrot.lane.b32.xlu1 %v1515_v33, %s2801_s10  ;;  %2417 = vperm.xlu0 %2763, %v2414_v38  }
 0x27e   : > { %2316 = vrot.lane.b32.xlu1 %v1526_v36, %s2801_s10 }
 0x2b9   : > { %v1537_v39 = vpop.permute.xlu0 %1536 }
 0x2bf   : > { %v1535_v40 = vpop.permute.xlu0 %1534 }
 0x2c0   : > { %v1540_v45 = vsel %vm287_vm3, %v1535_v40, %v1537_v39 }
 0x2c4   : > { %v1539_v41 = vpop.permute.xlu1 %1538  ;;  %v1721_v42 = vpop.permute.xlu0 %1720 }
 0x2c5   : > { %2654 = vmatpush3.bf16.msra.mxu1 %v1539_v41  ;;  %v1541_v43 = vsel %vm287_vm3, %v1537_v39, %v1539_v41 }
 0x2c6   : > { %1549 = vmatprep.subr.bf16.mxu0 %v1541_v43  ;;  %2659 = vmatprep.subr.bf16.mxu1 %v2791_v5 }
 0x2c7   : > { %1550 = vmatpush1.bf16.msra.mxu0 %v1540_v45 }
 0x2c8   : > { %2656 = vmatmul.mubr.msk.bf16.vlgmr.msra.gmra.mrb[36].mxu1 %vm1545_vm1, %v2535_v44  ;;  %1633 = vmatprep.subr.bf16.mxu0 %v1515_v33  ;;  %v1719_v46 = vpop.permute.xlu1 %1718  ;;  %v1819_v47 = vpop.permute.xlu0 %1818 }
 0x2c9   : > { %2660 = vmatpush3.bf16.msra.mxu1 %v1528_v37  ;;  %2661 = vmatprep.mubr.msk.bf16.mxu1 %vm2792_vm0, %v2791_v5  ;;  %v1723_v48 = vsel %vm524_vm4, %v1719_v46, %v1721_v42 }
 0x2ca   : > { %2536 = vmatmul.mubr.msk.bf16.vlgmr.msra.gmra.mrb[4].mxu0 %vm1545_vm1, %v2535_v44  ;;  %2665 = vmatprep.subr.bf16.mxu1 %v2791_v5 }
 0x2cb   : > { %1634 = vmatpush1.bf16.msra.mxu0 %v1526_v36  ;;  %1665 = vmatprep.mubr.bf16.mxu0 %v2795_v21 }
 0x2cc   : > { %1730 = vmatprep.subr.bf16.mxu0 %v1723_v48  ;;  %v1717_v49 = vpop.permute.xlu1 %1716  ;;  %v1817_v52 = vpop.permute.xlu0 %1816 }
 0x2cd   : > { %v1722_v55 = vsel %vm524_vm4, %v1717_v49, %v1719_v46  ;;  %v1822_v60 = vsel %vm661_vm6, %v1817_v52, %v1819_v47 }
 0x2d0   : > { %2662 = vmatmul.mubr.msk.bf16.vlgmr.msra.gmra.mrb[40].mxu1 %vm1545_vm1, %v1525_v50  ;;  %v1821_v51 = vpop.permute.xlu1 %1820  ;;  %v1921_v58 = vpop.permute.xlu0 %1920 }
 0x2d1   : > { %2666 = vmatpush3.bf16.msra.mxu1 %v1721_v42  ;;  %v1823_v53 = vsel %vm661_vm6, %v1819_v47, %v1821_v51  ;;  %2667 = vmatprep.mubr.msk.bf16.mxu1 %vm2792_vm0, %v2791_v5 }
 0x2d2   : > { %2538 = vmatmul.mubr.msk.bf16.vlgmr.msra.gmra.mrb[8].mxu0 %vm1545_vm1, %v1525_v50  ;;  %2671 = vmatprep.subr.bf16.mxu1 %v2791_v5 }
 0x2d3   : > { %1731 = vmatpush1.bf16.msra.mxu0 %v1722_v55  ;;  %1762 = vmatprep.mubr.bf16.mxu0 %v2795_v21 }
 0x2d4   : > { %1830 = vmatprep.subr.bf16.mxu0 %v1823_v53  ;;  %v1919_v56 = vpop.permute.xlu1 %1918  ;;  %v2019_v62 = vpop.permute.xlu0 %2018 }
 0x2d5   : > { %v1923_v61 = vsel %vm798_vm7, %v1919_v56, %v1921_v58 }
 0x2d8   : > { %2668 = vmatmul.mubr.msk.bf16.vlgmr.msra.gmra.mrb[44].mxu1 %vm1545_vm1, %v2540_v57  ;;  %v1917_v59 = vpop.permute.xlu1 %1916  ;;  %v2017_v2 = vpop.permute.xlu0 %2016 }
 0x2d9   : > { %2672 = vmatpush3.bf16.msra.mxu1 %v1821_v51  ;;  %2673 = vmatprep.mubr.msk.bf16.mxu1 %vm2792_vm0, %v2791_v5  ;;  %v1922_v1 = vsel %vm798_vm7, %v1917_v59, %v1919_v56  ;;  %v2022_v9 = vsel %vm935_vm8, %v2017_v2, %v2019_v62 }
 0x2da   : > { %2541 = vmatmul.mubr.msk.bf16.vlgmr.msra.gmra.mrb[12].mxu0 %vm1545_vm1, %v2540_v57  ;;  %2677 = vmatprep.subr.bf16.mxu1 %v2791_v5 }
 0x2db   : > { %1831 = vmatpush1.bf16.msra.mxu0 %v1822_v60  ;;  %1862 = vmatprep.mubr.bf16.mxu0 %v2795_v21 }
 0x2dc   : > { %1930 = vmatprep.subr.bf16.mxu0 %v1923_v61  ;;  %v2021_v0 = vpop.permute.xlu1 %2020  ;;  %v2121_v8 = vpop.permute.xlu0 %2120 }
 0x2dd   : > { %v2023_v4 = vsel %vm935_vm8, %v2019_v62, %v2021_v0 }
 0x2e0   : > { %2674 = vmatmul.mubr.msk.bf16.vlgmr.msra.gmra.mrb[48].mxu1 %vm1545_vm1, %v2543_v63  ;;  %v2119_v6 = vpop.permute.xlu1 %2118  ;;  %v2219_v54 = vpop.permute.xlu0 %2218 }
 0x2e1   : > { %2678 = vmatpush3.bf16.msra.mxu1 %v1921_v58  ;;  %2679 = vmatprep.mubr.msk.bf16.mxu1 %vm2792_vm0, %v2791_v5  ;;  %v2123_v11 = vsel %vm1072_vm9, %v2119_v6, %v2121_v8 }
 0x2e2   : > { %2544 = vmatmul.mubr.msk.bf16.vlgmr.msra.gmra.mrb[16].mxu0 %vm1545_vm1, %v2543_v63  ;;  %2683 = vmatprep.subr.bf16.mxu1 %v2791_v5 }
 0x2e3   : > { %1931 = vmatpush1.bf16.msra.mxu0 %v1922_v1  ;;  %1962 = vmatprep.mubr.bf16.mxu0 %v2795_v21 }
 0x2e4   : > { %2030 = vmatprep.subr.bf16.mxu0 %v2023_v4  ;;  %v2117_v10 = vpop.permute.xlu1 %2116  ;;  %v2217_v16 = vpop.permute.xlu0 %2216 }
 0x2e5   : > { %v2122_v14 = vsel %vm1072_vm9, %v2117_v10, %v2119_v6  ;;  %v2222_v19 = vsel %vm1209_vm10, %v2217_v16, %v2219_v54 }
 0x2e8   : > { %2680 = vmatmul.mubr.msk.bf16.vlgmr.msra.gmra.mrb[52].mxu1 %vm1545_vm1, %v2546_v7  ;;  %v2221_v13 = vpop.permute.xlu1 %2220  ;;  %v2321_v20 = vpop.permute.xlu0 %2320 }
 0x2e9   : > { %2684 = vmatpush3.bf16.msra.mxu1 %v2021_v0  ;;  %2685 = vmatprep.mubr.msk.bf16.mxu1 %vm2792_vm0, %v2791_v5  ;;  %v2223_v15 = vsel %vm1209_vm10, %v2219_v54, %v2221_v13 }
 0x2ea   : > { %2547 = vmatmul.mubr.msk.bf16.vlgmr.msra.gmra.mrb[20].mxu0 %vm1545_vm1, %v2546_v7  ;;  %2689 = vmatprep.subr.bf16.mxu1 %v2791_v5 }
 0x2eb   : > { %2031 = vmatpush1.bf16.msra.mxu0 %v2022_v9  ;;  %2062 = vmatprep.mubr.bf16.mxu0 %v2795_v21 }
 0x2ec   : > { %2130 = vmatprep.subr.bf16.mxu0 %v2123_v11  ;;  %v2319_v18 = vpop.permute.xlu1 %2318 }
 0x2ed   : > { %v2323_v22 = vsel %vm1346_vm11, %v2319_v18, %v2321_v20 }
 0x2f0   : > { %2686 = vmatmul.mubr.msk.bf16.vlgmr.msra.gmra.mrb[56].mxu1 %vm1545_vm1, %v2549_v12  ;;  %v2317_v24 = vpop.permute.xlu1 %2316 }
 0x2f1   : > { %2690 = vmatpush3.bf16.msra.mxu1 %v2121_v8  ;;  %2691 = vmatprep.mubr.msk.bf16.mxu1 %vm2792_vm0, %v2791_v5  ;;  %v2322_v25 = vsel %vm1346_vm11, %v2317_v24, %v2319_v18 }
 0x2f2   : > { %2550 = vmatmul.mubr.msk.bf16.vlgmr.msra.gmra.mrb[24].mxu0 %vm1545_vm1, %v2549_v12  ;;  %2695 = vmatprep.subr.bf16.mxu1 %v2791_v5 }
 0x2f3   : > { %2131 = vmatpush1.bf16.msra.mxu0 %v2122_v14  ;;  %2162 = vmatprep.mubr.bf16.mxu0 %v2795_v21 }
 0x2f4   : > { %2230 = vmatprep.subr.bf16.mxu0 %v2223_v15 }
 0x2f8   : > { %2692 = vmatmul.mubr.msk.bf16.vlgmr.msra.gmra.mrb[60].mxu1 %vm1545_vm1, %v2552_v17 }
 0x2f9   : > { %2696 = vmatpush3.bf16.msra.mxu1 %v2221_v13  ;;  %2697 = vmatprep.mubr.msk.bf16.mxu1 %vm2792_vm0, %v2791_v5 }
 0x2fa   : > { %2553 = vmatmul.mubr.msk.bf16.vlgmr.msra.gmra.mrb[28].mxu0 %vm1545_vm1, %v2552_v17  ;;  %2701 = vmatprep.subr.bf16.mxu1 %v2791_v5 }
 0x2fb   : > { %2231 = vmatpush1.bf16.msra.mxu0 %v2222_v19  ;;  %2262 = vmatprep.mubr.bf16.mxu0 %v2795_v21 }
 0x2fc   : > { %2330 = vmatprep.subr.bf16.mxu0 %v2323_v22 }
 0x300   : > { %2698 = vmatmul.mubr.msk.bf16.vlgmr.msra.gmra.mrb[64].mxu1 %vm1545_vm1, %v2555_v23 }
 0x301   : > { %2702 = vmatpush3.bf16.msra.mxu1 %v2321_v20  ;;  %2703 = vmatprep.mubr.msk.bf16.mxu1 %vm2792_vm0, %v2791_v5  ;;  %vm2428_vm0 = vcmask 556032  }
 0x302   : > { %2556 = vmatmul.mubr.msk.bf16.vlgmr.msra.gmra.mrb[32].mxu0 %vm1545_vm1, %v2555_v23 }
 0x303   : > { %2331 = vmatpush1.bf16.msra.mxu0 %v2322_v25  ;;  %2362 = vmatprep.mubr.bf16.mxu0 %v2795_v21 }
 0x308   : > { %2704 = vmatmul.mubr.msk.bf16.vlgmr.msra.gmra.mrb[68].mxu1 %vm1545_vm1, %v2558_v26 }
 0x30a   : > { %2559 = vmatmul.mubr.msk.bf16.vlgmr.msra.gmra.mrb[36].mxu0 %vm1545_vm1, %v2558_v26 }
 0x39b   : > { %v1624_v27 = vpop.f32.mrb[36].mxu1 }
 0x39c   : > { %v2657_v28 = vpop.f32.mrb[37].mxu1 }
 0x39d   : > { %v1583_v3 = vpop.f32.mrb[4].mxu0  ;;  %v1627_v29 = vpop.f32.mrb[38].mxu1 }
 0x39e   : > { %v1585_v5 = vpop.f32.mrb[5].mxu0  ;;  %v2658_v30 = vpop.f32.mrb[39].mxu1 }
 0x39f   : > { %v1587_v31 = vpop.f32.mrb[6].mxu0 }
 0x3a0   : > { %v1588_v32 = vpop.f32.mrb[7].mxu0 }
 0x3a3   : > { %v1708_v33 = vpop.f32.mrb[40].mxu1 }
 0x3a4   : > { %v1709_v34 = vadd.f32 %v1708_v33, %v1624_v27  ;;  %v2663_v35 = vpop.f32.mrb[41].mxu1 }
 0x3a5   : > { %v1667_v21 = vpop.f32.mrb[8].mxu0  ;;  %v1711_v36 = vpop.f32.mrb[42].mxu1 }
 0x3a6   : > { %v1668_v37 = vadd.f32 %v1667_v21, %v1583_v3  ;;  %v1669_v38 = vpop.f32.mrb[9].mxu0  ;;  %v2664_v39 = vpop.f32.mrb[43].mxu1 }
 0x3a7   : > { %v1670_v40 = vadd.f32 %v1669_v38, %v1585_v5  ;;  %v1671_v41 = vpop.f32.mrb[10].mxu0 }
 0x3a8   : > { %v1672_v42 = vpop.f32.mrb[11].mxu0 }
 0x3ab   : > { %v1805_v43 = vpop.f32.mrb[44].mxu1 }
 0x3ac   : > { %v1813_v44 = vadd.f32 %v1805_v43, %v1709_v34  ;;  %v2669_v45 = vpop.f32.mrb[45].mxu1 }
 0x3ad   : > { %v1764_v46 = vpop.f32.mrb[12].mxu0  ;;  %v1808_v47 = vpop.f32.mrb[46].mxu1 }
 0x3ae   : > { %v1811_v48 = vadd.f32 %v1764_v46, %v1668_v37  ;;  %v1766_v49 = vpop.f32.mrb[13].mxu0  ;;  %v2670_v50 = vpop.f32.mrb[47].mxu1 }
 0x3af   : > { %v1812_v51 = vadd.f32 %v1766_v49, %v1670_v40  ;;  %v1768_v52 = vpop.f32.mrb[14].mxu0  ;;  %v2418_v46 = vpop.permute.xlu0 %2417 }
 0x3b0   : > { %v1769_v53 = vpop.f32.mrb[15].mxu0 }
 0x3b3   : > { %v1905_v55 = vpop.f32.mrb[48].mxu1 }
 0x3b4   : > { %v1913_v56 = vadd.f32 %v1905_v55, %v1813_v44  ;;  %v2675_v57 = vpop.f32.mrb[49].mxu1 }
 0x3b5   : > { %v1864_v58 = vpop.f32.mrb[16].mxu0  ;;  %v1908_v59 = vpop.f32.mrb[50].mxu1 }
 0x3b6   : > { %v1911_v60 = vadd.f32 %v1864_v58, %v1811_v48  ;;  %v1866_v61 = vpop.f32.mrb[17].mxu0  ;;  %v2676_v62 = vpop.f32.mrb[51].mxu1 }
 0x3b7   : > { %v1912_v63 = vadd.f32 %v1866_v61, %v1812_v51  ;;  %v1868_v0 = vpop.f32.mrb[18].mxu0 }
 0x3b8   : > { %v1869_v1 = vpop.f32.mrb[19].mxu0 }
 0x3bb   : > { %v2005_v2 = vpop.f32.mrb[52].mxu1 }
 0x3bc   : > { %v2013_v4 = vadd.f32 %v2005_v2, %v1913_v56  ;;  %v2681_v6 = vpop.f32.mrb[53].mxu1 }
 0x3bd   : > { %v1964_v7 = vpop.f32.mrb[20].mxu0  ;;  %v2008_v8 = vpop.f32.mrb[54].mxu1 }
 0x3be   : > { %v2011_v9 = vadd.f32 %v1964_v7, %v1911_v60  ;;  %v1966_v10 = vpop.f32.mrb[21].mxu0  ;;  %v2682_v11 = vpop.f32.mrb[55].mxu1 }
 0x3bf   : > { %v2012_v12 = vadd.f32 %v1966_v10, %v1912_v63  ;;  %v1968_v54 = vpop.f32.mrb[22].mxu0 }
 0x3c0   : > { %v1969_v13 = vpop.f32.mrb[23].mxu0 }
 0x3c3   : > { %v2105_v14 = vpop.f32.mrb[56].mxu1 }
 0x3c4   : > { %v2113_v15 = vadd.f32 %v2105_v14, %v2013_v4  ;;  %v2687_v16 = vpop.f32.mrb[57].mxu1 }
 0x3c5   : > { %v2064_v17 = vpop.f32.mrb[24].mxu0  ;;  %v2108_v18 = vpop.f32.mrb[58].mxu1 }
 0x3c6   : > { %v2111_v19 = vadd.f32 %v2064_v17, %v2011_v9  ;;  %v2066_v20 = vpop.f32.mrb[25].mxu0  ;;  %v2688_v22 = vpop.f32.mrb[59].mxu1 }
 0x3c7   : > { %v2112_v23 = vadd.f32 %v2066_v20, %v2012_v12  ;;  %v2068_v24 = vpop.f32.mrb[26].mxu0 }
 0x3c8   : > { %v2069_v25 = vpop.f32.mrb[27].mxu0 }
 0x3cb   : > { %v2205_v26 = vpop.f32.mrb[60].mxu1 }
 0x3cc   : > { %v2213_v27 = vadd.f32 %v2205_v26, %v2113_v15  ;;  %v2693_v28 = vpop.f32.mrb[61].mxu1 }
 0x3cd   : > { %v2164_v3 = vpop.f32.mrb[28].mxu0  ;;  %v2208_v29 = vpop.f32.mrb[62].mxu1 }
 0x3ce   : > { %v2211_v5 = vadd.f32 %v2164_v3, %v2111_v19  ;;  %v2166_v30 = vpop.f32.mrb[29].mxu0  ;;  %v2694_v31 = vpop.f32.mrb[63].mxu1 }
 0x3cf   : > { %v2212_v32 = vadd.f32 %v2166_v30, %v2112_v23  ;;  %v2168_v33 = vpop.f32.mrb[30].mxu0 }
 0x3d0   : > { %v2169_v34 = vpop.f32.mrb[31].mxu0 }
 0x3d3   : > { %v2305_v35 = vpop.f32.mrb[64].mxu1 }
 0x3d4   : > { %v2313_v21 = vadd.f32 %v2305_v35, %v2213_v27  ;;  %v2699_v36 = vpop.f32.mrb[65].mxu1 }
 0x3d5   : > { %v2264_v37 = vpop.f32.mrb[32].mxu0  ;;  %v2308_v38 = vpop.f32.mrb[66].mxu1 }
 0x3d6   : > { %v2311_v39 = vadd.f32 %v2264_v37, %v2211_v5  ;;  %v2266_v40 = vpop.f32.mrb[33].mxu0  ;;  %v2700_v41 = vpop.f32.mrb[67].mxu1 }
 0x3d7   : > { %v2312_v42 = vadd.f32 %v2266_v40, %v2212_v32  ;;  %v2268_v43 = vpop.f32.mrb[34].mxu0 }
 0x3d8   : > { %v2269_v44 = vpop.f32.mrb[35].mxu0 }
 0x3db   : > { %v2405_v45 = vpop.f32.mrb[68].mxu1 }
 0x3dc   : > { %v2413_v47 = vadd.f32 %v2405_v45, %v2313_v21  ;;  %v2705_v48 = vpop.f32.mrb[69].mxu1 }
 0x3dd   : > { %v2364_v49 = vpop.f32.mrb[36].mxu0  ;;  %v2408_v50 = vpop.f32.mrb[70].mxu1 }
 0x3de   : > { %v2422_v51 = vadd.f32 %v2418_v46, %v2413_v47  ;;  %v2411_v52 = vadd.f32 %v2364_v49, %v2311_v39  ;;  %v2366_v53 = vpop.f32.mrb[37].mxu0  ;;  %v2706_v55 = vpop.f32.mrb[71].mxu1 }
 0x3df   : > { %v2412_v56 = vadd.f32 %v2366_v53, %v2312_v42  ;;  %v2368_v57 = vpop.f32.mrb[38].mxu0 }
 0x3e0   : > { %v2425_v58 = vmax.f32 %v2422_v51, 0.0  ;;  %v2420_v59 = vadd.f32 %v2418_v46, %v2411_v52  ;;  %v2369_v60 = vpop.f32.mrb[39].mxu0 }
 0x3e1   : > { %v2421_v61 = vadd.f32 %v2418_v46, %v2412_v56 }
 0x3e2   : > { %v2423_v62 = vmax.f32 %v2420_v59, 0.0  ;;  %2429 = vst.msk [vmem:[%s251_s28 + $0x10] sm:$0xff] %vm2428_vm0, %v2425_v58 }
 0x3e3   : > { %v2424_v63 = vmax.f32 %v2421_v61, 0.0 }
 0x3e4   : > { %2426 = vst [vmem:[%s251_s28] sm:$0xff] %v2423_v62 }
 0x3e5   : > { %2427 = vst [vmem:[%s251_s28 + $0x8] sm:$0xff] %v2424_v63 }
 0x3e6 PF: > { %s16_s21 = sadd.s32 1, %s2788_s21  }
 0x3e7   : > { %p13_p4 = scmp.ge.s32.totalorder %s16_s21, 4  }
 0x3e9   :  { %15 = sbr.rel (!%p13_p4) target bundleno = 1 (0x1), region = 90 }

// kernel: colornet_forward.3
= control target key start
LH: loop header
LB: loop body
LE: loop exit
PB: predicated region body
PF: predicated region fallthrough
CT: control target
= control target key end

     0   :  { %s940_s24 = smov 0   ;;  %s942_s25 = smov 0   ;;  %s1040_s0 = inlined_call_operand.vmem [shape: f32[2,32,128], index: 0, kind: input, shape index: {}]   ;;  %s1041_s1 = inlined_call_operand.vmem [shape: f32[32,32], index: 1, kind: input, shape index: {}]   ;;  %s1042_s2 = inlined_call_operand.vmem [shape: f32[32,1], index: 2, kind: input, shape index: {}]   ;;  %s1043_s3 = inlined_call_operand.vmem [shape: f32[32,32], index: 3, kind: input, shape index: {}]   ;;  %s1044_s4 = inlined_call_operand.vmem [shape: f32[32,1], index: 4, kind: input, shape index: {}]   ;;  %s1045_s5 = inlined_call_operand.vmem [shape: f32[3,32], index: 5, kind: input, shape index: {}]   ;;  %s1046_s6 = inlined_call_operand.vmem [shape: f32[3,1], index: 6, kind: input, shape index: {}]   ;;  %s1047_s7 = inlined_call_operand.vmem [shape: f32[2,3,128], index: 7, kind: output, shape index: {}]  }
   0x1   :  { %s944_s26 = smov 0  }
   0x2 LB: > { %s29_s27 = sadd.s32 1, %s890_s25  ;;  %p739_p0 = scmp.ge.s32.totalorder %s894_s26, 1  ;;  %s894_s26 = sphi %s944_s26, %s17_s26   ;;  %s890_s25 = sphi %s942_s25, %s1049_s25   ;;  %s886_s24 = sphi %s940_s24, %s1048_s24  }
   0x3   : > { %p31_p1 = scmp.ge.s32.totalorder %s29_s27, 2  ;;  %p256_p2 = scmp.lt.s32.totalorder %s894_s26, 3 }
   0x5   : > { %s1051_s27 = smov (%p31_p1, %s29_s27), 0  ;;  %p257_p3 = pnand %p739_p0, %p256_p2 }
   0x6   : > { %p293_p4 = scmp.lt.s32.totalorder (!%p257_p3), %s886_s24, 1  ;;  %v312_v0 = vld [vmem:[%s1041_s1] sm:$0xff] (!%p257_p3)  ;;  %vm340_vm0 = vcmask (!%p257_p3), 261120   ;;  %v896_v1 = vmov (!%p257_p3), 0   ;;  %v318_v3 = vld [vmem:[%s1042_s2 + $0x10] sm:$0xff] (!%p257_p3)  ;;  %v317_v4 = vld [vmem:[%s1042_s2 + $0x8] sm:$0xff] (!%p257_p3) }
   0x7   : > { %260 = sbr.rel (%p257_p3) target bundleno = 722 (0x2d2), region = 48  ;;  %785 = vmatprep.mubr.msk.f32.mxu0 (!%p257_p3), %vm340_vm0, %v312_v0  ;;  %866 = vset.pattern.permute.xlu0 (!%p257_p3), %v896_v1  ;;  %v316_v2 = vld [vmem:[%s1042_s2] sm:$0xff] (!%p257_p3)  ;;  %v319_v5 = vld [vmem:[%s1042_s2 + $0x18] sm:$0xff] (!%p257_p3)  ;;  %v447_v13 = vld [vmem:[%s1044_s4 + $0x8] sm:$0xff] (!%p257_p3)  ;;  %v897_v42 = vmov (!%p257_p3), 0.0|0.0   ;;  %vm898_vm1 = vmmov (!%p257_p3), 0  }
   0x8   : > { %322 = vperm.xlu0 (!%p257_p3), %866, %v316_v2   ;;  %867 = vset.pattern.permute.xlu1 (!%p257_p3), %v896_v1  ;;  %v446_v11 = vld [vmem:[%s1044_s4] sm:$0xff] (!%p257_p3)  ;;  %v448_v14 = vld [vmem:[%s1044_s4 + $0x10] sm:$0xff] (!%p257_p3)  ;;  %v449_v15 = vld [vmem:[%s1044_s4 + $0x18] sm:$0xff] (!%p257_p3)  ;;  %v899_v43 = vmov (!%p257_p3), 0.0  }
   0x9   : > { %332 = vperm.xlu1 (!%p257_p3), %867, %v318_v3   ;;  %v313_v16 = vld [vmem:[%s1041_s1 + $0x8] sm:$0xff] (!%p257_p3)  ;;  %v314_v17 = vld [vmem:[%s1041_s1 + $0x10] sm:$0xff] (!%p257_p3)  ;;  %v572_v18 = vld [vmem:[%s1046_s6] sm:$0x7] (!%p257_p3) }
   0xa   : > { %v315_v19 = vld [vmem:[%s1041_s1 + $0x18] sm:$0xff] (!%p257_p3)  ;;  %v442_v20 = vld [vmem:[%s1043_s3] sm:$0xff] (!%p257_p3)  ;;  %v443_v39 = vld [vmem:[%s1043_s3 + $0x8] sm:$0xff] (!%p257_p3) }
   0xb   : > { %799 = vmatprep.mubr.msk.f32.mxu1 (!%p257_p3), %vm340_vm0, %v442_v20  ;;  %v444_v40 = vld [vmem:[%s1043_s3 + $0x10] sm:$0xff] (!%p257_p3)  ;;  %v445_v41 = vld [vmem:[%s1043_s3 + $0x18] sm:$0xff] (!%p257_p3)  ;;  %v571_v62 = vld [vmem:[%s1045_s5] sm:$0x7] (!%p257_p3) }
   0xc   : > { %327 = vperm.xlu0 (!%p257_p3), %866, %v317_v4  }
   0xd   : > { %337 = vperm.xlu1 (!%p257_p3), %867, %v319_v5  }
   0xe   : > { %s1053_s24 = smov (!%p293_p4, %s886_s24), 1 }
   0xf   : > { %s755_s13 = sshll.u32 %s1053_s24, 5  ;;  %s742_s30 = sshll.u32 %s1053_s24, 2 }
  0x10   : > { %s300_s18 = scalar_lea.vmem %s1040_s0, %s755_s13  ;;  %452 = vperm.xlu0 %866, %v446_v11   ;;  %s307_s10 = scalar_lea.vmem %s1047_s7, %s742_s30 }
  0x11   : > { %v308_v6 = vld [vmem:[%s300_s18] sm:$0xff]  ;;  %v309_v7 = vld [vmem:[%s300_s18 + $0x8] sm:$0xff]  ;;  %v310_v8 = vld [vmem:[%s300_s18 + $0x10] sm:$0xff]  ;;  %457 = vperm.xlu1 %867, %v447_v13  }
  0x12   : > { %v816_v9 = vpack.c.bf16 %v309_v7, %v308_v6  ;;  %v311_v10 = vld [vmem:[%s300_s18 + $0x18] sm:$0xff] }
  0x13   : > { %v820_v12 = vpack.c.bf16 %v311_v10, %v310_v8 }
  0x14   : > { %817 = vmatprep.subr.bf16.mxu0 %v816_v9  ;;  %462 = vperm.xlu0 %866, %v448_v14  }
  0x15   : > { %819 = vmatpush3.bf16.msra.mxu0 %v816_v9  ;;  %467 = vperm.xlu1 %867, %v449_v15  }
  0x16   : > { %821 = vmatprep.subr.bf16.mxu0 %v820_v12 }
  0x18   : > { %575 = vperm.xlu0 %866, %v572_v18  }
  0x19   : > { %823 = vmatpush3.bf16.msra.mxu0 %v820_v12 }
  0x1a   : > { %832 = vmatprep.subr.bf16.mxu0 %v897_v42 }
  0x1c   : > { %786 = vmatmul.mubr.msk.f32.vlgmr.msra.gmra.mrb[0].mxu0 %vm340_vm0, %v313_v16 }
  0x1d   : > { %788 = vmatprep.mubr.msk.f32.mxu0 %vm340_vm0, %v314_v17 }
  0x20   : > { %789 = vmatmul.mubr.msk.f32.gmra.mrb[2].mxu0 %vm340_vm0, %v315_v19 }
  0x21   : > { %813 = vmatprep.mubr.msk.f32.mxu0 %vm898_vm1, %v899_v43 }
  0x87   : > { %v323_v21 = vpop.permute.xlu0 %322 }
  0x88   : > { %v333_v22 = vpop.permute.xlu1 %332 }
  0x8b   : > { %v328_v23 = vpop.permute.xlu0 %327 }
  0x8c   : > { %v338_v29 = vpop.permute.xlu1 %337 }
  0x8f   : > { %v453_v45 = vpop.permute.xlu0 %452 }
  0x90   : > { %v458_v44 = vpop.permute.xlu1 %457 }
  0x93   : > { %v463_v54 = vpop.permute.xlu0 %462 }
  0x94   : > { %v468_v51 = vpop.permute.xlu1 %467 }
  0x97   : > { %v576_v63 = vpop.permute.xlu0 %575 }
  0xef   : > { %v787_v24 = vpop.f32.mrb[0].mxu0 }
  0xf0   : > { %v425_v25 = vadd.f32 %v787_v24, %v328_v23  ;;  %v419_v26 = vpop.f32.mrb[1].mxu0 }
  0xf1   : > { %v420_v27 = vadd.f32 %v419_v26, %v323_v21 }
  0xf2   : > { %v439_v28 = vmax.f32 %v425_v25, 0.0 }
  0xf3   : > { %v438_v30 = vmax.f32 %v420_v27, 0.0  ;;  %v790_v31 = vpop.f32.mrb[2].mxu0 }
  0xf4   : > { %v435_v32 = vadd.f32 %v790_v31, %v338_v29  ;;  %v429_v33 = vpop.f32.mrb[3].mxu0 }
  0xf5   : > { %v430_v34 = vadd.f32 %v429_v33, %v333_v22  ;;  %v824_v35 = vpack.c.bf16 %v439_v28, %v438_v30 }
  0xf6   : > { %v441_v36 = vmax.f32 %v435_v32, 0.0 }
  0xf7   : > { %v440_v37 = vmax.f32 %v430_v34, 0.0  ;;  %825 = vmatprep.subr.bf16.mxu1 %v824_v35 }
  0xf8   : > { %827 = vmatpush3.bf16.msra.mxu1 %v824_v35 }
  0xf9   : > { %v828_v38 = vpack.c.bf16 %v441_v36, %v440_v37 }
  0xfb   : > { %829 = vmatprep.subr.bf16.mxu1 %v828_v38 }
  0xfc   : > { %831 = vmatpush3.bf16.msra.mxu1 %v828_v38 }
  0xff   : > { %800 = vmatmul.mubr.msk.f32.vlgmr.msra.gmra.mrb[0].mxu1 %vm340_vm0, %v443_v39 }
 0x100   : > { %802 = vmatprep.mubr.msk.f32.mxu1 %vm340_vm0, %v444_v40 }
 0x103   : > { %803 = vmatmul.mubr.msk.f32.gmra.mrb[2].mxu1 %vm340_vm0, %v445_v41 }
 0x1d2   : > { %v801_v46 = vpop.f32.mrb[0].mxu1 }
 0x1d3   : > { %v554_v47 = vadd.f32 %v801_v46, %v458_v44  ;;  %v548_v48 = vpop.f32.mrb[1].mxu1 }
 0x1d4   : > { %v549_v49 = vadd.f32 %v548_v48, %v453_v45 }
 0x1d5   : > { %v568_v50 = vmax.f32 %v554_v47, 0.0 }
 0x1d6   : > { %v567_v52 = vmax.f32 %v549_v49, 0.0  ;;  %v804_v53 = vpop.f32.mrb[2].mxu1 }
 0x1d7   : > { %v564_v55 = vadd.f32 %v804_v53, %v468_v51  ;;  %v558_v56 = vpop.f32.mrb[3].mxu1 }
 0x1d8   : > { %v833_v57 = vpack.c.bf16 %v568_v50, %v567_v52  ;;  %v559_v58 = vadd.f32 %v558_v56, %v463_v54 }
 0x1d9   : > { %v570_v59 = vmax.f32 %v564_v55, 0.0 }
 0x1da   : > { %v569_v60 = vmax.f32 %v559_v58, 0.0  ;;  %834 = vmatpush3.bf16.msra.mxu0 %v833_v57 }
 0x1db   : > { %835 = vmatprep.subr.bf16.mxu0 %v897_v42 }
 0x1dc   : > { %v836_v61 = vpack.c.bf16 %v570_v59, %v569_v60 }
 0x1de   : > { %837 = vmatpush3.bf16.msra.mxu0 %v836_v61 }
 0x1e1   : > { %814 = vmatmul.mubr.msk.f32.vlgmr.msra.gmra.mrb[4].mxu0 %vm340_vm0, %v571_v62 }
 0x2b4   : > { %v647_v0 = vpop.f32.mrb[4].mxu0 }
 0x2b5   : > { %v648_v1 = vadd.f32 %v647_v0, %v576_v63  ;;  %v815_v2 = vpop.f32.mrb[5].mxu0 }
 0x2b7   : > { %v752_v3 = vmul.f32 -1.442695, %v648_v1 }
 0x2b9   : > { %868 = vpow2.f32 %v752_v3 }
 0x2c3   : > { %v869_v4 = vpop.eup %868 }
 0x2c4   : > { %v654_v5 = vadd.f32 1.0, %v869_v4 }
 0x2c6   : > { %870 = vrcp.f32 %v654_v5 }
 0x2d0   : > { %v871_v6 = vpop.eup %870 }
 0x2d1   : > { %657 = vst [vmem:[%s307_s10] sm:$0x7] %v871_v6 }
 0x2d2 PF: > { %s17_s26 = sadd.s32 1, %s894_s26   ;;  %s1048_s24 = smov %s890_s25 }
 0x2d3   : > { %p14_p5 = scmp.ge.s32.totalorder %s17_s26, 4   ;;  %s1049_s25 = smov %s1051_s27 }
 0x2d5   :  { %16 = sbr.rel (!%p14_p5) target bundleno = 2 (0x2), region = 78 }

</bundles_post_ra>
